<compile_context>
chip_gen: v7x
topology: tpu7x:2x2x1
jax: 0.10.0
libtpu: 0.0.40
codegen_flags: <defaults>
</compile_context>

<pallas_src>
import jax
import jax.numpy as jnp
from jax import lax
from jax.experimental import pallas as pl
from jax.experimental.pallas import tpu as pltpu


def _leaky_relu(x, slope=0.2):
    return jnp.where(x > 0, x, slope * x)


def critic_kernel(x_ref, w1_ref, b1_ref, w2_ref, b2_ref, w3_ref, b3_ref, o_ref):
    # x_ref: (TB, D) float32 batch tile straight from HBM. Cast to bf16 here so
    # the image is read from HBM once in f32 (4 B/elem) instead of a separate
    # wrapper cast (4+2 B) plus a bf16 kernel read (2 B).
    x = x_ref[...].astype(jnp.bfloat16)

    # Layer 1: bf16 MXU matmul, f32 accumulation; bias + LeakyReLU in f32 (VPU).
    h1 = jnp.dot(x, w1_ref[...], preferred_element_type=jnp.float32) + b1_ref[...]
    h1 = _leaky_relu(h1)

    # Layer 2: downcast activation to bf16 for the MXU, keep f32 accumulation.
    h2 = jnp.dot(h1.astype(jnp.bfloat16), w2_ref[...],
                 preferred_element_type=jnp.float32) + b2_ref[...]
    h2 = _leaky_relu(h2)

    # Layer 3 (out_features=1): compute a lane-dense (1, TB) row per tile:
    # w3_row (1, H2) contracted against h2 (TB, H2) over H2 (the q @ k^T
    # pattern), so the per-tile store is an unmasked lane-dense vst instead of
    # a masked (TB, 1) column store.
    row = lax.dot_general(w3_ref[...], h2.astype(jnp.bfloat16),
                          dimension_numbers=(((1,), (1,)), ((), ())),
                          preferred_element_type=jnp.float32)   # (1, TB)
    row = row + b3_ref[...]                                     # b3 is (1, 1)
    o_ref[...] = row.reshape(o_ref.shape).astype(o_ref.dtype)   # (1, 1, TB)


def _round_up(n, m):
    return ((n + m - 1) // m) * m


@jax.jit
def critic_forward(img, params):
    """img: (B, C, H, W) float32. Returns (B, 1) float32 validity scores."""
    w1, b1, w2, b2, w3, b3 = params
    B = img.shape[0]
    x = img.reshape(B, -1)  # free row-major flatten, same as torch .view(B, -1)
    D = x.shape[1]
    H1 = w1.shape[1]
    H2 = w2.shape[1]

    # ---- batch tiling -------------------------------------------------------
    #  * TB targets 512 rows (mem-bound kernels reach ~85% of HBM roofline
    #    there; per grid-step overhead ~0.35us) and is always a multiple of 8.
    #  * >= 2 (even #) tiles whenever B >= 16 so v7x's two TensorCores both get
    #    work under dimension_semantics=("parallel",).
    #  * B is padded only up to n_tiles * TB, which for the usual power-of-two
    #    batches means no padding (and no jnp.pad copy of x) at all.
    TB_TARGET = 512
    B8 = _round_up(B, 8)
    n_tiles = max(1, pl.cdiv(B8, TB_TARGET))
    if B8 >= 16:
        n_tiles = max(n_tiles, 2)
        if n_tiles % 2:
            n_tiles += 1
    TB = _round_up(pl.cdiv(B8, n_tiles), 8)
    B_pad = n_tiles * TB
    if B_pad != B:
        x = jnp.pad(x, ((0, B_pad - B), (0, 0)))  # small pad; garbage rows sliced off

    # Weights: bf16 for MXU operands, f32 biases. w3.reshape(1, H2) is a valid
    # "transpose" only because the output dimension is 1.
    w1_bf16 = w1.astype(jnp.bfloat16)
    w2_bf16 = w2.astype(jnp.bfloat16)
    w3_row = w3.reshape(1, H2).astype(jnp.bfloat16)
    b1_row = b1.reshape(1, H1).astype(jnp.float32)
    b2_row = b2.reshape(1, H2).astype(jnp.float32)
    b3_val = b3.reshape(1, 1).astype(jnp.float32)

    flops = 2 * B_pad * (D * H1 + H1 * H2 + H2)
    bytes_accessed = (x.size * 4                                   # f32 image read once
                      + w1_bf16.size * 2 + w2_bf16.size * 2 + w3_row.size * 2
                      + (b1_row.size + b2_row.size + b3_val.size) * 4
                      + B_pad * 4)                                 # f32 output

    stream_in = pl.BlockSpec((TB, D), lambda i: (i, 0))            # x streamed per tile
    resident = lambda bs: pl.BlockSpec(bs, lambda i: (0, 0))       # VMEM-resident weights
    # NOTE: the resident operands could be single-buffered (pipeline_mode) to
    # save ~1.3 MiB of VMEM; left at the default since the whole footprint is
    # only a few MiB on every TPU generation (and well under v7x's 64 MiB).
    # TODO(synk): add a K-tiling grid axis if this is reused with D in the 8-16K
    # range (w1 + x tiles would then approach v7x's default scoped VMEM limit).

    out = pl.pallas_call(
        critic_kernel,
        out_shape=jax.ShapeDtypeStruct((n_tiles, 1, TB), jnp.float32),
        grid=(n_tiles,),
        in_specs=[
            stream_in,              # x   (f32, streamed)
            resident((D, H1)),      # w1  (bf16)
            resident((1, H1)),      # b1  (f32)
            resident((H1, H2)),     # w2  (bf16)
            resident((1, H2)),      # b2  (f32)
            resident((1, H2)),      # w3 row (bf16)
            resident((1, 1)),       # b3  (f32)
        ],
        out_specs=pl.BlockSpec((1, 1, TB), lambda i: (i, 0, 0)),   # lane-dense row
        compiler_params=pltpu.CompilerParams(
            dimension_semantics=("parallel",)),
        cost_estimate=pl.CostEstimate(flops=flops, transcendentals=0,
                                      bytes_accessed=bytes_accessed),
    )(x, w1_bf16, b1_row, w2_bf16, b2_row, w3_row, b3_val)

    return out.reshape(B_pad, 1)[:B]


def init_critic_params(key, in_features, h1=512, h2=256):
    """Deterministic init mimicking PyTorch nn.Linear default (U[-1/sqrt(fan_in), +])."""
    def linear_init(k, fan_in, fan_out):
        kw, kb = jax.random.split(k)
        bound = 1.0 / jnp.sqrt(fan_in)
        w = jax.random.uniform(kw, (fan_in, fan_out), jnp.float32, -bound, bound)
        b = jax.random.uniform(kb, (1, fan_out), jnp.float32, -bound, bound)
        return w, b

    k1, k2, k3 = jax.random.split(key, 3)
    w1, b1 = linear_init(k1, in_features, h1)
    w2, b2 = linear_init(k2, h1, h2)
    w3, b3 = linear_init(k3, h2, 1)
    return (w1, b1, w2, b2, w3, b3)


def critic_reference_f32(img, params):
    """Full-precision pure-JAX reference."""
    w1, b1, w2, b2, w3, b3 = params
    x = img.reshape(img.shape[0], -1)
    h = _leaky_relu(jnp.dot(x, w1) + b1)
    h = _leaky_relu(jnp.dot(h, w2) + b2)
    return jnp.dot(h, w3) + b3


def critic_reference_matched(img, params):
    """Pure-JAX reference with the same mixed-precision policy as the kernel."""
    w1, b1, w2, b2, w3, b3 = params
    x = img.reshape(img.shape[0], -1).astype(jnp.bfloat16)
    h = jnp.dot(x, w1.astype(jnp.bfloat16),
                preferred_element_type=jnp.float32) + b1.reshape(1, -1)
    h = _leaky_relu(h)
    h = jnp.dot(h.astype(jnp.bfloat16), w2.astype(jnp.bfloat16),
                preferred_element_type=jnp.float32) + b2.reshape(1, -1)
    h = _leaky_relu(h)
    out = jnp.dot(h.astype(jnp.bfloat16), w3.astype(jnp.bfloat16).reshape(-1, 1),
                  preferred_element_type=jnp.float32) + b3.reshape(1, 1)
    return out


if __name__ == "__main__":
    key = jax.random.PRNGKey(0)
    k_img, k_params = jax.random.split(key)

    # Small, module-consistent shapes: img_shape = (4, 16, 16), batch = 2.
    B, C, H, W = 2, 4, 16, 16
    img = jax.random.normal(k_img, (B, C, H, W), jnp.float32)
    params = init_critic_params(k_params, in_features=C * H * W)

    validity = jax.block_until_ready(critic_forward(img, params))

    ref_matched = critic_reference_matched(img, params)  # same precision policy
    ref_f32 = critic_reference_f32(img, params)          # full f32 forward

    assert validity.shape == (B, 1), validity.shape
    assert jnp.allclose(validity, ref_matched, atol=2e-3, rtol=2e-3), (validity, ref_matched)
    assert jnp.allclose(validity, ref_f32, atol=3e-2, rtol=3e-2), (validity, ref_f32)

    print("KERNEL_OK")
</pallas_src>

<mosaic_0001>
module attributes {stable_mosaic.version = 11 : i64} {
  func.func @critic_kernel(%arg0: i32, %arg1: memref<8x1024xf32, #tpu.memory_space<vmem>>, %arg2: memref<1024x512xbf16, #tpu.memory_space<vmem>>, %arg3: memref<1x512xf32, #tpu.memory_space<vmem>>, %arg4: memref<512x256xbf16, #tpu.memory_space<vmem>>, %arg5: memref<1x256xf32, #tpu.memory_space<vmem>>, %arg6: memref<1x256xbf16, #tpu.memory_space<vmem>>, %arg7: memref<1x1xf32, #tpu.memory_space<vmem>>, %arg8: memref<1x1x8xf32, #tpu.memory_space<vmem>>) attributes {dimension_semantics = [#tpu.dimension_semantics<parallel>], iteration_bounds = array<i64: 1>, scalar_prefetch = 0 : i64, scratch_operands = 0 : i64, tpu.core_type = #tpu.core_type<tc>, window_params = [{transform_indices = @transform_0, window_bounds = array<i64: 8, 1024>}, {pipeline_mode = #tpu.pipeline_mode<synchronous>, transform_indices = @transform_1, window_bounds = array<i64: 1024, 512>}, {pipeline_mode = #tpu.pipeline_mode<synchronous>, transform_indices = @transform_2, window_bounds = array<i64: 1, 512>}, {pipeline_mode = #tpu.pipeline_mode<synchronous>, transform_indices = @transform_3, window_bounds = array<i64: 512, 256>}, {pipeline_mode = #tpu.pipeline_mode<synchronous>, transform_indices = @transform_4, window_bounds = array<i64: 1, 256>}, {pipeline_mode = #tpu.pipeline_mode<synchronous>, transform_indices = @transform_5, window_bounds = array<i64: 1, 256>}, {pipeline_mode = #tpu.pipeline_mode<synchronous>, transform_indices = @transform_6, window_bounds = array<i64: 1, 1>}, {transform_indices = @transform_7, window_bounds = array<i64: 1, 1, 8>}]} {
    %c0 = arith.constant 0 : index
    %c0_0 = arith.constant 0 : index
    %0 = vector.load %arg1[%c0, %c0_0] : memref<8x1024xf32, #tpu.memory_space<vmem>>, vector<8x1024xf32>
    %1 = arith.truncf %0 : vector<8x1024xf32> to vector<8x1024xbf16>
    %c0_1 = arith.constant 0 : index
    %c0_2 = arith.constant 0 : index
    %2 = vector.load %arg2[%c0_1, %c0_2] : memref<1024x512xbf16, #tpu.memory_space<vmem>>, vector<1024x512xbf16>
    %cst = arith.constant dense<0.000000e+00> : vector<8x512xf32>
    %3 = tpu.matmul %1, %2, %cst {dimension_numbers = #tpu.dot_dimension_numbers<[1], [0], [0], [1], [0, 0, 1, 1], [], []>} : vector<8x1024xbf16>, vector<1024x512xbf16>, vector<8x512xf32> -> vector<8x512xf32>
    %c0_3 = arith.constant 0 : index
    %c0_4 = arith.constant 0 : index
    %4 = vector.load %arg3[%c0_3, %c0_4] : memref<1x512xf32, #tpu.memory_space<vmem>>, vector<1x512xf32>
    %5 = vector.broadcast %4 : vector<1x512xf32> to vector<8x512xf32>
    %6 = arith.addf %3, %5 : vector<8x512xf32>
    %cst_5 = arith.constant 0.000000e+00 : f32
    %7 = vector.broadcast %cst_5 : f32 to vector<8x512xf32>
    %8 = arith.cmpf ogt, %6, %7 : vector<8x512xf32>
    %cst_6 = arith.constant 2.000000e-01 : f32
    %9 = vector.broadcast %cst_6 : f32 to vector<8x512xf32>
    %10 = arith.mulf %9, %6 : vector<8x512xf32>
    %11 = arith.select %8, %6, %10 : vector<8x512xi1>, vector<8x512xf32>
    %12 = arith.truncf %11 : vector<8x512xf32> to vector<8x512xbf16>
    %c0_7 = arith.constant 0 : index
    %c0_8 = arith.constant 0 : index
    %13 = vector.load %arg4[%c0_7, %c0_8] : memref<512x256xbf16, #tpu.memory_space<vmem>>, vector<512x256xbf16>
    %cst_9 = arith.constant dense<0.000000e+00> : vector<8x256xf32>
    %14 = tpu.matmul %12, %13, %cst_9 {dimension_numbers = #tpu.dot_dimension_numbers<[1], [0], [0], [1], [0, 0, 1, 1], [], []>} : vector<8x512xbf16>, vector<512x256xbf16>, vector<8x256xf32> -> vector<8x256xf32>
    %c0_10 = arith.constant 0 : index
    %c0_11 = arith.constant 0 : index
    %15 = vector.load %arg5[%c0_10, %c0_11] : memref<1x256xf32, #tpu.memory_space<vmem>>, vector<1x256xf32>
    %16 = vector.broadcast %15 : vector<1x256xf32> to vector<8x256xf32>
    %17 = arith.addf %14, %16 : vector<8x256xf32>
    %cst_12 = arith.constant 0.000000e+00 : f32
    %18 = vector.broadcast %cst_12 : f32 to vector<8x256xf32>
    %19 = arith.cmpf ogt, %17, %18 : vector<8x256xf32>
    %cst_13 = arith.constant 2.000000e-01 : f32
    %20 = vector.broadcast %cst_13 : f32 to vector<8x256xf32>
    %21 = arith.mulf %20, %17 : vector<8x256xf32>
    %22 = arith.select %19, %17, %21 : vector<8x256xi1>, vector<8x256xf32>
    %c0_14 = arith.constant 0 : index
    %c0_15 = arith.constant 0 : index
    %23 = vector.load %arg6[%c0_14, %c0_15] : memref<1x256xbf16, #tpu.memory_space<vmem>>, vector<1x256xbf16>
    %24 = arith.truncf %22 : vector<8x256xf32> to vector<8x256xbf16>
    %cst_16 = arith.constant dense<0.000000e+00> : vector<1x8xf32>
    %25 = tpu.matmul %23, %24, %cst_16 {dimension_numbers = #tpu.dot_dimension_numbers<[1], [1], [0], [0], [0, 0, 1, 0], [], []>} : vector<1x256xbf16>, vector<8x256xbf16>, vector<1x8xf32> -> vector<1x8xf32>
    %c0_17 = arith.constant 0 : index
    %c0_18 = arith.constant 0 : index
    %26 = vector.load %arg7[%c0_17, %c0_18] : memref<1x1xf32, #tpu.memory_space<vmem>>, vector<1x1xf32>
    %27 = vector.broadcast %26 : vector<1x1xf32> to vector<1x8xf32>
    %28 = arith.addf %25, %27 : vector<1x8xf32>
    %29 = vector.shape_cast %28 : vector<1x8xf32> to vector<1x1x8xf32>
    %c0_19 = arith.constant 0 : index
    %c0_20 = arith.constant 0 : index
    %c0_21 = arith.constant 0 : index
    %30 = vector.load %arg8[%c0_19, %c0_20, %c0_21] : memref<1x1x8xf32, #tpu.memory_space<vmem>>, vector<1x1x8xf32>
    tpu.vector_store %arg8[%c0_19, %c0_20, %c0_21], %29 {strides = array<i32>} : memref<1x1x8xf32, #tpu.memory_space<vmem>>, vector<1x1x8xf32>,
    return
  }
  func.func @transform_0(%arg0: i32) -> (i32, i32) {
    %c0_i32 = arith.constant 0 : i32
    %c0_i32_0 = arith.constant 0 : i32
    return %arg0, %c0_i32 : i32, i32
  }
  func.func @transform_1(%arg0: i32) -> (i32, i32) {
    %c0_i32 = arith.constant 0 : i32
    %c0_i32_0 = arith.constant 0 : i32
    %c0_i32_1 = arith.constant 0 : i32
    return %c0_i32, %c0_i32_0 : i32, i32
  }
  func.func @transform_2(%arg0: i32) -> (i32, i32) {
    %c0_i32 = arith.constant 0 : i32
    %c0_i32_0 = arith.constant 0 : i32
    %c0_i32_1 = arith.constant 0 : i32
    return %c0_i32, %c0_i32_0 : i32, i32
  }
  func.func @transform_3(%arg0: i32) -> (i32, i32) {
    %c0_i32 = arith.constant 0 : i32
    %c0_i32_0 = arith.constant 0 : i32
    %c0_i32_1 = arith.constant 0 : i32
    return %c0_i32, %c0_i32_0 : i32, i32
  }
  func.func @transform_4(%arg0: i32) -> (i32, i32) {
    %c0_i32 = arith.constant 0 : i32
    %c0_i32_0 = arith.constant 0 : i32
    %c0_i32_1 = arith.constant 0 : i32
    return %c0_i32, %c0_i32_0 : i32, i32
  }
  func.func @transform_5(%arg0: i32) -> (i32, i32) {
    %c0_i32 = arith.constant 0 : i32
    %c0_i32_0 = arith.constant 0 : i32
    %c0_i32_1 = arith.constant 0 : i32
    return %c0_i32, %c0_i32_0 : i32, i32
  }
  func.func @transform_6(%arg0: i32) -> (i32, i32) {
    %c0_i32 = arith.constant 0 : i32
    %c0_i32_0 = arith.constant 0 : i32
    %c0_i32_1 = arith.constant 0 : i32
    return %c0_i32, %c0_i32_0 : i32, i32
  }
  func.func @transform_7(%arg0: i32) -> (i32, i32, i32) {
    %c0_i32 = arith.constant 0 : i32
    %c0_i32_0 = arith.constant 0 : i32
    %c0_i32_1 = arith.constant 0 : i32
    return %arg0, %c0_i32, %c0_i32_0 : i32, i32, i32
  }
}

</mosaic_0001>

<bundles_post_ra>
// kernel: critic_forward.1
= control target key start
LH: loop header
LB: loop body
LE: loop exit
PB: predicated region body
PF: predicated region fallthrough
CT: control target
= control target key end

     0   :  { %vm2509_vm6 = vcmask 57344   ;;  %s4449_s1 = inlined_call_operand.vmem [shape: bf16[1024,512], index: 1, kind: input, shape index: {}]   ;;  %s4450_s0 = inlined_call_operand.vmem [shape: f32[8,1024], index: 0, kind: input, shape index: {}]   ;;  %s4451_s3 = inlined_call_operand.vmem [shape: bf16[512,256], index: 3, kind: input, shape index: {}]   ;;  %s4452_s2 = inlined_call_operand.vmem [shape: f32[1,512], index: 2, kind: input, shape index: {}]   ;;  %s4453_s5 = inlined_call_operand.vmem [shape: bf16[1,256], index: 5, kind: input, shape index: {}]   ;;  %s4454_s6 = inlined_call_operand.<no memory space> [shape: f32[1,1], index: 6, kind: input, shape index: {}]   ;;  %s4455_s4 = inlined_call_operand.vmem [shape: f32[1,256], index: 4, kind: input, shape index: {}]   ;;  %s4456_s7 = inlined_call_operand.vmem [shape: f32[1,1,8], index: 7, kind: output, shape index: {}]  }
   0x1   :  { %v2871_v0 = vld [vmem:[%s4449_s1 + $0x4] ss:$16 sps:$4 sm:$0xff]   ;;  %v2875_v2 = vld [vmem:[%s4449_s1] ss:$16 sps:$4 sm:$0xff]   ;;  %v30_v46 = vld [vmem:[%s4450_s0 + $0x8] sm:$0xff] }
   0x2   :  { %v2873_v1 = vld [vmem:[%s4449_s1 + $0x204] ss:$16 sps:$4 sm:$0xff]   ;;  %1603 = vmatprep.subr.bf16.mxu1 %v2871_v0  ;;  %v2876_v3 = vld [vmem:[%s4449_s1 + $0x200] ss:$16 sps:$4 sm:$0xff]   ;;  %v3537_v48 = vpack.c.bf16 %v30_v46, %v30_v46  ;;  %v32_v49 = vld [vmem:[%s4450_s0 + $0x18] sm:$0xff] }
   0x3   :  { %1644 = vmatprep.subr.bf16.mxu0 %v2873_v1  ;;  %v2877_v4 = vld [vmem:[%s4449_s1 + $0x24] ss:$16 sps:$4 sm:$0xff]   ;;  %1604 = vmatpush1.bf16.msra.mxu1 %v2875_v2  ;;  %v2881_v6 = vld [vmem:[%s4449_s1 + $0x20] ss:$16 sps:$4 sm:$0xff]   ;;  %v3548_v52 = vpack.c.bf16 %v32_v49, %v32_v49  ;;  %v3024_v49 = vld [vmem:[%s4449_s1 + $0x128] ss:$16 sps:$4 sm:$0xff]  }
   0x4   :  { %1645 = vmatpush1.bf16.msra.mxu0 %v2876_v3  ;;  %v2879_v5 = vld [vmem:[%s4449_s1 + $0x224] ss:$16 sps:$4 sm:$0xff]   ;;  %1605 = vmatprep.subr.bf16.mxu1 %v2877_v4  ;;  %v2882_v7 = vld [vmem:[%s4449_s1 + $0x220] ss:$16 sps:$4 sm:$0xff]  }
   0x5   :  { %1646 = vmatprep.subr.bf16.mxu0 %v2879_v5  ;;  %v2883_v8 = vld [vmem:[%s4449_s1 + $0x44] ss:$16 sps:$4 sm:$0xff]   ;;  %v2887_v10 = vld [vmem:[%s4449_s1 + $0x40] ss:$16 sps:$4 sm:$0xff]   ;;  %1635 = vmatprep.mubr.bf16.mxu1 %v3537_v48 }
   0x6   :  { %v2885_v9 = vld [vmem:[%s4449_s1 + $0x244] ss:$16 sps:$4 sm:$0xff]   ;;  %v2888_v11 = vld [vmem:[%s4449_s1 + $0x240] ss:$16 sps:$4 sm:$0xff]   ;;  %1676 = vmatprep.mubr.bf16.mxu0 %v3548_v52 }
   0x7   :  { %1606 = vmatpush1.bf16.msra.mxu1 %v2881_v6  ;;  %v2889_v12 = vld [vmem:[%s4449_s1 + $0x64] ss:$16 sps:$4 sm:$0xff]   ;;  %v2893_v14 = vld [vmem:[%s4449_s1 + $0x60] ss:$16 sps:$4 sm:$0xff]  }
   0x8   :  { %1647 = vmatpush1.bf16.msra.mxu0 %v2882_v7  ;;  %1607 = vmatprep.subr.bf16.mxu1 %v2883_v8  ;;  %v2891_v13 = vld [vmem:[%s4449_s1 + $0x264] ss:$16 sps:$4 sm:$0xff]   ;;  %v2894_v15 = vld [vmem:[%s4449_s1 + $0x260] ss:$16 sps:$4 sm:$0xff]   ;;  %v2972_v7 = vld [vmem:[%s4449_s1 + $0xc] ss:$16 sps:$4 sm:$0xff]  }
   0x9   :  { %1648 = vmatprep.subr.bf16.mxu0 %v2885_v9  ;;  %v2895_v16 = vld [vmem:[%s4449_s1 + $0x84] ss:$16 sps:$4 sm:$0xff]   ;;  %v2899_v18 = vld [vmem:[%s4449_s1 + $0x80] ss:$16 sps:$4 sm:$0xff]  }
   0xa   :  { %v2897_v17 = vld [vmem:[%s4449_s1 + $0x284] ss:$16 sps:$4 sm:$0xff]   ;;  %v2900_v19 = vld [vmem:[%s4449_s1 + $0x280] ss:$16 sps:$4 sm:$0xff]  }
   0xb   :  { %1608 = vmatpush1.bf16.msra.mxu1 %v2887_v10  ;;  %v2901_v20 = vld [vmem:[%s4449_s1 + $0xa4] ss:$16 sps:$4 sm:$0xff]   ;;  %v2905_v22 = vld [vmem:[%s4449_s1 + $0xa0] ss:$16 sps:$4 sm:$0xff]   ;;  %v2970_v10 = vld [vmem:[%s4449_s1 + $0x8] ss:$16 sps:$4 sm:$0xff]  }
   0xc   :  { %1649 = vmatpush1.bf16.msra.mxu0 %v2888_v11  ;;  %1609 = vmatprep.subr.bf16.mxu1 %v2889_v12  ;;  %v2903_v21 = vld [vmem:[%s4449_s1 + $0x2a4] ss:$16 sps:$4 sm:$0xff]   ;;  %v2906_v23 = vld [vmem:[%s4449_s1 + $0x2a0] ss:$16 sps:$4 sm:$0xff]  }
   0xd   :  { %1650 = vmatprep.subr.bf16.mxu0 %v2891_v13  ;;  %v2907_v24 = vld [vmem:[%s4449_s1 + $0xc4] ss:$16 sps:$4 sm:$0xff]   ;;  %v2911_v26 = vld [vmem:[%s4449_s1 + $0xc0] ss:$16 sps:$4 sm:$0xff]   ;;  %v2978_v13 = vld [vmem:[%s4449_s1 + $0x2c] ss:$16 sps:$4 sm:$0xff]  }
   0xe   :  { %v2909_v25 = vld [vmem:[%s4449_s1 + $0x2c4] ss:$16 sps:$4 sm:$0xff]   ;;  %v2912_v27 = vld [vmem:[%s4449_s1 + $0x2c0] ss:$16 sps:$4 sm:$0xff]  }
   0xf   :  { %1610 = vmatpush1.bf16.msra.mxu1 %v2893_v14  ;;  %v2913_v28 = vld [vmem:[%s4449_s1 + $0xe4] ss:$16 sps:$4 sm:$0xff]   ;;  %v2917_v30 = vld [vmem:[%s4449_s1 + $0xe0] ss:$16 sps:$4 sm:$0xff]  }
  0x10   :  { %1651 = vmatpush1.bf16.msra.mxu0 %v2894_v15  ;;  %1611 = vmatprep.subr.bf16.mxu1 %v2895_v16  ;;  %v2915_v29 = vld [vmem:[%s4449_s1 + $0x2e4] ss:$16 sps:$4 sm:$0xff]   ;;  %v2918_v31 = vld [vmem:[%s4449_s1 + $0x2e0] ss:$16 sps:$4 sm:$0xff]   ;;  %v2976_v15 = vld [vmem:[%s4449_s1 + $0x28] ss:$16 sps:$4 sm:$0xff]  }
  0x11   :  { %1652 = vmatprep.subr.bf16.mxu0 %v2897_v17  ;;  %v2919_v32 = vld [vmem:[%s4449_s1 + $0x104] ss:$16 sps:$4 sm:$0xff]   ;;  %v2923_v34 = vld [vmem:[%s4449_s1 + $0x100] ss:$16 sps:$4 sm:$0xff]   ;;  %v2984_v17 = vld [vmem:[%s4449_s1 + $0x4c] ss:$16 sps:$4 sm:$0xff]  }
  0x12   :  { %v2921_v33 = vld [vmem:[%s4449_s1 + $0x304] ss:$16 sps:$4 sm:$0xff]   ;;  %v2924_v35 = vld [vmem:[%s4449_s1 + $0x300] ss:$16 sps:$4 sm:$0xff]  }
  0x13   :  { %1612 = vmatpush1.bf16.msra.mxu1 %v2899_v18  ;;  %v2925_v36 = vld [vmem:[%s4449_s1 + $0x124] ss:$16 sps:$4 sm:$0xff]   ;;  %v2929_v38 = vld [vmem:[%s4449_s1 + $0x120] ss:$16 sps:$4 sm:$0xff]  }
  0x14   :  { %1653 = vmatpush1.bf16.msra.mxu0 %v2900_v19  ;;  %1613 = vmatprep.subr.bf16.mxu1 %v2901_v20  ;;  %v2927_v37 = vld [vmem:[%s4449_s1 + $0x324] ss:$16 sps:$4 sm:$0xff]   ;;  %v2930_v39 = vld [vmem:[%s4449_s1 + $0x320] ss:$16 sps:$4 sm:$0xff]   ;;  %v2982_v19 = vld [vmem:[%s4449_s1 + $0x48] ss:$16 sps:$4 sm:$0xff]  }
  0x15   :  { %1654 = vmatprep.subr.bf16.mxu0 %v2903_v21  ;;  %v2931_v40 = vld [vmem:[%s4449_s1 + $0x144] ss:$16 sps:$4 sm:$0xff]   ;;  %v2935_v42 = vld [vmem:[%s4449_s1 + $0x140] ss:$16 sps:$4 sm:$0xff]   ;;  %v2990_v21 = vld [vmem:[%s4449_s1 + $0x6c] ss:$16 sps:$4 sm:$0xff]  }
  0x16   :  { %v2933_v41 = vld [vmem:[%s4449_s1 + $0x344] ss:$16 sps:$4 sm:$0xff]   ;;  %v2936_v43 = vld [vmem:[%s4449_s1 + $0x340] ss:$16 sps:$4 sm:$0xff]  }
  0x17   :  { %1614 = vmatpush1.bf16.msra.mxu1 %v2905_v22  ;;  %v2937_v44 = vld [vmem:[%s4449_s1 + $0x164] ss:$16 sps:$4 sm:$0xff]   ;;  %v2941_v47 = vld [vmem:[%s4449_s1 + $0x160] ss:$16 sps:$4 sm:$0xff]  }
  0x18   :  { %1655 = vmatpush1.bf16.msra.mxu0 %v2906_v23  ;;  %1615 = vmatprep.subr.bf16.mxu1 %v2907_v24  ;;  %v2939_v45 = vld [vmem:[%s4449_s1 + $0x364] ss:$16 sps:$4 sm:$0xff]   ;;  %v2942_v50 = vld [vmem:[%s4449_s1 + $0x360] ss:$16 sps:$4 sm:$0xff]   ;;  %v2988_v23 = vld [vmem:[%s4449_s1 + $0x68] ss:$16 sps:$4 sm:$0xff]  }
  0x19   :  { %1656 = vmatprep.subr.bf16.mxu0 %v2909_v25  ;;  %v2943_v51 = vld [vmem:[%s4449_s1 + $0x184] ss:$16 sps:$4 sm:$0xff]   ;;  %v2947_v54 = vld [vmem:[%s4449_s1 + $0x180] ss:$16 sps:$4 sm:$0xff]   ;;  %v2996_v25 = vld [vmem:[%s4449_s1 + $0x8c] ss:$16 sps:$4 sm:$0xff]  }
  0x1a   :  { %v2945_v53 = vld [vmem:[%s4449_s1 + $0x384] ss:$16 sps:$4 sm:$0xff]   ;;  %v2948_v55 = vld [vmem:[%s4449_s1 + $0x380] ss:$16 sps:$4 sm:$0xff]  }
  0x1b   :  { %1616 = vmatpush1.bf16.msra.mxu1 %v2911_v26  ;;  %v2949_v56 = vld [vmem:[%s4449_s1 + $0x1a4] ss:$16 sps:$4 sm:$0xff]   ;;  %v2953_v58 = vld [vmem:[%s4449_s1 + $0x1a0] ss:$16 sps:$4 sm:$0xff]  }
  0x1c   :  { %1657 = vmatpush1.bf16.msra.mxu0 %v2912_v27  ;;  %1617 = vmatprep.subr.bf16.mxu1 %v2913_v28  ;;  %v2951_v57 = vld [vmem:[%s4449_s1 + $0x3a4] ss:$16 sps:$4 sm:$0xff]   ;;  %v2954_v59 = vld [vmem:[%s4449_s1 + $0x3a0] ss:$16 sps:$4 sm:$0xff]   ;;  %v2994_v27 = vld [vmem:[%s4449_s1 + $0x88] ss:$16 sps:$4 sm:$0xff]  }
  0x1d   :  { %1658 = vmatprep.subr.bf16.mxu0 %v2915_v29  ;;  %v2955_v60 = vld [vmem:[%s4449_s1 + $0x1c4] ss:$16 sps:$4 sm:$0xff]   ;;  %v2959_v62 = vld [vmem:[%s4449_s1 + $0x1c0] ss:$16 sps:$4 sm:$0xff]   ;;  %v3002_v29 = vld [vmem:[%s4449_s1 + $0xac] ss:$16 sps:$4 sm:$0xff]  }
  0x1e   :  { %v2957_v61 = vld [vmem:[%s4449_s1 + $0x3c4] ss:$16 sps:$4 sm:$0xff]   ;;  %v2960_v63 = vld [vmem:[%s4449_s1 + $0x3c0] ss:$16 sps:$4 sm:$0xff]  }
  0x1f   :  { %1618 = vmatpush1.bf16.msra.mxu1 %v2917_v30  ;;  %v2961_v0 = vld [vmem:[%s4449_s1 + $0x1e4] ss:$16 sps:$4 sm:$0xff]   ;;  %v2965_v2 = vld [vmem:[%s4449_s1 + $0x1e0] ss:$16 sps:$4 sm:$0xff]  }
  0x20   :  { %1659 = vmatpush1.bf16.msra.mxu0 %v2918_v31  ;;  %1619 = vmatprep.subr.bf16.mxu1 %v2919_v32  ;;  %v2963_v1 = vld [vmem:[%s4449_s1 + $0x3e4] ss:$16 sps:$4 sm:$0xff]   ;;  %v2966_v3 = vld [vmem:[%s4449_s1 + $0x3e0] ss:$16 sps:$4 sm:$0xff]   ;;  %v3000_v31 = vld [vmem:[%s4449_s1 + $0xa8] ss:$16 sps:$4 sm:$0xff]  }
  0x21   :  { %1660 = vmatprep.subr.bf16.mxu0 %v2921_v33  ;;  %v29_v4 = vld [vmem:[%s4450_s0] sm:$0xff]  ;;  %v31_v6 = vld [vmem:[%s4450_s0 + $0x10] sm:$0xff]  ;;  %v3008_v33 = vld [vmem:[%s4449_s1 + $0xcc] ss:$16 sps:$4 sm:$0xff]  }
  0x22   :  { %v2969_v5 = vld [vmem:[%s4449_s1 + $0x404] ss:$16 sps:$4 sm:$0xff]   ;;  %v3609_v8 = vpack.c.bf16 %v29_v4, %v29_v4  ;;  %v2967_v9 = vld [vmem:[%s4449_s1 + $0x400] ss:$16 sps:$4 sm:$0xff]   ;;  %v3617_v11 = vpack.c.bf16 %v31_v6, %v31_v6  ;;  %v3056_v4 = vld [vmem:[%s4449_s1 + $0x1cc] ss:$16 sps:$4 sm:$0xff]  }
  0x23   :  { %1620 = vmatpush1.bf16.msra.mxu1 %v2923_v34  ;;  %v2975_v12 = vld [vmem:[%s4449_s1 + $0x424] ss:$16 sps:$4 sm:$0xff]   ;;  %v2973_v14 = vld [vmem:[%s4449_s1 + $0x420] ss:$16 sps:$4 sm:$0xff]   ;;  %v34_v34 = vld [vmem:[%s4450_s0 + $0x28] sm:$0xff] }
  0x24   :  { %1661 = vmatpush1.bf16.msra.mxu0 %v2924_v35  ;;  %1621 = vmatprep.subr.bf16.mxu1 %v2925_v36  ;;  %v2981_v16 = vld [vmem:[%s4449_s1 + $0x444] ss:$16 sps:$4 sm:$0xff]   ;;  %v2979_v18 = vld [vmem:[%s4449_s1 + $0x440] ss:$16 sps:$4 sm:$0xff]   ;;  %v3694_v36 = vpack.c.bf16 %v34_v34, %v34_v34  ;;  %v3054_v6 = vld [vmem:[%s4449_s1 + $0x1c8] ss:$16 sps:$4 sm:$0xff]  }
  0x25   :  { %1662 = vmatprep.subr.bf16.mxu0 %v2927_v37  ;;  %v2987_v20 = vld [vmem:[%s4449_s1 + $0x464] ss:$16 sps:$4 sm:$0xff]   ;;  %v2985_v22 = vld [vmem:[%s4449_s1 + $0x460] ss:$16 sps:$4 sm:$0xff]   ;;  %v3006_v37 = vld [vmem:[%s4449_s1 + $0xc8] ss:$16 sps:$4 sm:$0xff]  }
  0x26   :  { %v2993_v24 = vld [vmem:[%s4449_s1 + $0x484] ss:$16 sps:$4 sm:$0xff]   ;;  %v2991_v26 = vld [vmem:[%s4449_s1 + $0x480] ss:$16 sps:$4 sm:$0xff]   ;;  %v3090_v34 = vld [vmem:[%s4449_s1 + $0x288] ss:$16 sps:$4 sm:$0xff]  }
  0x27   :  { %1622 = vmatpush1.bf16.msra.mxu1 %v2929_v38  ;;  %v2999_v28 = vld [vmem:[%s4449_s1 + $0x4a4] ss:$16 sps:$4 sm:$0xff]   ;;  %v2997_v30 = vld [vmem:[%s4449_s1 + $0x4a0] ss:$16 sps:$4 sm:$0xff]  }
  0x28   :  { %1663 = vmatpush1.bf16.msra.mxu0 %v2930_v39  ;;  %1623 = vmatprep.subr.bf16.mxu1 %v2931_v40  ;;  %v3005_v32 = vld [vmem:[%s4449_s1 + $0x4c4] ss:$16 sps:$4 sm:$0xff]   ;;  %v3003_v35 = vld [vmem:[%s4449_s1 + $0x4c0] ss:$16 sps:$4 sm:$0xff]   ;;  %v3014_v39 = vld [vmem:[%s4449_s1 + $0xec] ss:$16 sps:$4 sm:$0xff]  }
  0x29   :  { %1664 = vmatprep.subr.bf16.mxu0 %v2933_v41  ;;  %v3011_v38 = vld [vmem:[%s4449_s1 + $0x4e4] ss:$16 sps:$4 sm:$0xff]   ;;  %v3009_v40 = vld [vmem:[%s4449_s1 + $0x4e0] ss:$16 sps:$4 sm:$0xff]   ;;  %v3012_v41 = vld [vmem:[%s4449_s1 + $0xe8] ss:$16 sps:$4 sm:$0xff]  }
  0x2a   :  { %v3023_v46 = vld [vmem:[%s4449_s1 + $0x524] ss:$16 sps:$4 sm:$0xff]  }
  0x2b   :  { %1624 = vmatpush1.bf16.msra.mxu1 %v2935_v42  ;;  %v3017_v42 = vld [vmem:[%s4449_s1 + $0x504] ss:$16 sps:$4 sm:$0xff]  }
  0x2c   :  { %1665 = vmatpush1.bf16.msra.mxu0 %v2936_v43  ;;  %1625 = vmatprep.subr.bf16.mxu1 %v2937_v44  ;;  %v3020_v43 = vld [vmem:[%s4449_s1 + $0x10c] ss:$16 sps:$4 sm:$0xff]   ;;  %v3015_v44 = vld [vmem:[%s4449_s1 + $0x500] ss:$16 sps:$4 sm:$0xff]  }
  0x2d   :  { %1666 = vmatprep.subr.bf16.mxu0 %v2939_v45  ;;  %v3018_v45 = vld [vmem:[%s4449_s1 + $0x108] ss:$16 sps:$4 sm:$0xff]  }
  0x2f   :  { %1626 = vmatpush1.bf16.msra.mxu1 %v2941_v47  ;;  %v3026_v47 = vld [vmem:[%s4449_s1 + $0x12c] ss:$16 sps:$4 sm:$0xff]  }
  0x30   :  { %1667 = vmatpush1.bf16.msra.mxu0 %v2942_v50  ;;  %1627 = vmatprep.subr.bf16.mxu1 %v2943_v51  ;;  %v3029_v50 = vld [vmem:[%s4449_s1 + $0x544] ss:$16 sps:$4 sm:$0xff]   ;;  %v3032_v51 = vld [vmem:[%s4449_s1 + $0x14c] ss:$16 sps:$4 sm:$0xff]  }
  0x31   :  { %1668 = vmatprep.subr.bf16.mxu0 %v2945_v53  ;;  %v3027_v53 = vld [vmem:[%s4449_s1 + $0x540] ss:$16 sps:$4 sm:$0xff]  }
  0x33   :  { %1628 = vmatpush1.bf16.msra.mxu1 %v2947_v54  ;;  %v3030_v54 = vld [vmem:[%s4449_s1 + $0x148] ss:$16 sps:$4 sm:$0xff]  }
  0x34   :  { %1669 = vmatpush1.bf16.msra.mxu0 %v2948_v55  ;;  %1629 = vmatprep.subr.bf16.mxu1 %v2949_v56  ;;  %v3035_v55 = vld [vmem:[%s4449_s1 + $0x564] ss:$16 sps:$4 sm:$0xff]   ;;  %v3038_v56 = vld [vmem:[%s4449_s1 + $0x16c] ss:$16 sps:$4 sm:$0xff]  }
  0x35   :  { %1670 = vmatprep.subr.bf16.mxu0 %v2951_v57  ;;  %v3033_v57 = vld [vmem:[%s4449_s1 + $0x560] ss:$16 sps:$4 sm:$0xff]  }
  0x37   :  { %1630 = vmatpush1.bf16.msra.mxu1 %v2953_v58  ;;  %v3036_v58 = vld [vmem:[%s4449_s1 + $0x168] ss:$16 sps:$4 sm:$0xff]  }
  0x38   :  { %1671 = vmatpush1.bf16.msra.mxu0 %v2954_v59  ;;  %1631 = vmatprep.subr.bf16.mxu1 %v2955_v60  ;;  %v3041_v59 = vld [vmem:[%s4449_s1 + $0x584] ss:$16 sps:$4 sm:$0xff]   ;;  %v3044_v60 = vld [vmem:[%s4449_s1 + $0x18c] ss:$16 sps:$4 sm:$0xff]  }
  0x39   :  { %1672 = vmatprep.subr.bf16.mxu0 %v2957_v61  ;;  %v3039_v61 = vld [vmem:[%s4449_s1 + $0x580] ss:$16 sps:$4 sm:$0xff]  }
  0x3b   :  { %1632 = vmatpush1.bf16.msra.mxu1 %v2959_v62  ;;  %v3042_v62 = vld [vmem:[%s4449_s1 + $0x188] ss:$16 sps:$4 sm:$0xff]  }
  0x3c   :  { %1673 = vmatpush1.bf16.msra.mxu0 %v2960_v63  ;;  %1633 = vmatprep.subr.bf16.mxu1 %v2961_v0  ;;  %v3047_v63 = vld [vmem:[%s4449_s1 + $0x5a4] ss:$16 sps:$4 sm:$0xff]   ;;  %v3050_v0 = vld [vmem:[%s4449_s1 + $0x1ac] ss:$16 sps:$4 sm:$0xff]  }
  0x3d   :  { %1674 = vmatprep.subr.bf16.mxu0 %v2963_v1  ;;  %v3045_v1 = vld [vmem:[%s4449_s1 + $0x5a0] ss:$16 sps:$4 sm:$0xff]  }
  0x3f   :  { %1634 = vmatpush1.bf16.msra.mxu1 %v2965_v2  ;;  %v3048_v2 = vld [vmem:[%s4449_s1 + $0x1a8] ss:$16 sps:$4 sm:$0xff]  }
  0x40   :  { %1675 = vmatpush1.bf16.msra.mxu0 %v2966_v3  ;;  %1767 = vmatprep.subr.bf16.mxu1 %v2972_v7  ;;  %v3053_v3 = vld [vmem:[%s4449_s1 + $0x5c4] ss:$16 sps:$4 sm:$0xff]  }
  0x41   :  { %1685 = vmatprep.subr.bf16.mxu0 %v2969_v5  ;;  %v3051_v5 = vld [vmem:[%s4449_s1 + $0x5c0] ss:$16 sps:$4 sm:$0xff]   ;;  %v3059_v7 = vld [vmem:[%s4449_s1 + $0x5e4] ss:$16 sps:$4 sm:$0xff]  }
  0x42   :  { %1636 = vmatmul.mubr.bf16.vlgmr.msra.gmra.mrb[0].mxu1 %v3609_v8 }
  0x43   :  { %1677 = vmatmul.mubr.bf16.vlgmr.msra.gmra.mrb[0].mxu0 %v3617_v11  ;;  %1768 = vmatpush1.bf16.msra.mxu1 %v2970_v10  ;;  %v3057_v10 = vld [vmem:[%s4449_s1 + $0x5e0] ss:$16 sps:$4 sm:$0xff]  }
  0x44   :  { %1686 = vmatpush1.bf16.msra.mxu0 %v2967_v9  ;;  %1769 = vmatprep.subr.bf16.mxu1 %v2978_v13  ;;  %v3062_v9 = vld [vmem:[%s4449_s1 + $0x1ec] ss:$16 sps:$4 sm:$0xff]   ;;  %v33_v13 = vld [vmem:[%s4450_s0 + $0x20] sm:$0xff] }
  0x45   :  { %1687 = vmatprep.subr.bf16.mxu0 %v2975_v12  ;;  %1799 = vmatprep.mubr.bf16.mxu1 %v3537_v48  ;;  %v3021_v48 = vld [vmem:[%s4449_s1 + $0x520] ss:$16 sps:$4 sm:$0xff]   ;;  %v3060_v12 = vld [vmem:[%s4449_s1 + $0x1e8] ss:$16 sps:$4 sm:$0xff]  }
  0x46   :  { %1717 = vmatprep.mubr.bf16.mxu0 %v3694_v36 }
  0x47   :  { %1770 = vmatpush1.bf16.msra.mxu1 %v2976_v15  ;;  %v3068_v15 = vld [vmem:[%s4449_s1 + $0x20c] ss:$16 sps:$4 sm:$0xff]  }
  0x48   :  { %1688 = vmatpush1.bf16.msra.mxu0 %v2973_v14  ;;  %1771 = vmatprep.subr.bf16.mxu1 %v2984_v17  ;;  %v3065_v14 = vld [vmem:[%s4449_s1 + $0x604] ss:$16 sps:$4 sm:$0xff]   ;;  %v3063_v17 = vld [vmem:[%s4449_s1 + $0x600] ss:$16 sps:$4 sm:$0xff]  }
  0x49   :  { %1689 = vmatprep.subr.bf16.mxu0 %v2981_v16  ;;  %v3817_v16 = vpack.c.bf16 %v33_v13, %v33_v13  ;;  %v3147_v13 = vld [vmem:[%s4449_s1 + $0x7c0] ss:$16 sps:$4 sm:$0xff]  }
  0x4b   :  { %1772 = vmatpush1.bf16.msra.mxu1 %v2982_v19  ;;  %v3071_v19 = vld [vmem:[%s4449_s1 + $0x624] ss:$16 sps:$4 sm:$0xff]  }
  0x4c   :  { %1690 = vmatpush1.bf16.msra.mxu0 %v2979_v18  ;;  %1773 = vmatprep.subr.bf16.mxu1 %v2990_v21  ;;  %v3066_v18 = vld [vmem:[%s4449_s1 + $0x208] ss:$16 sps:$4 sm:$0xff]  }
  0x4d   :  { %1691 = vmatprep.subr.bf16.mxu0 %v2987_v20  ;;  %v3074_v20 = vld [vmem:[%s4449_s1 + $0x22c] ss:$16 sps:$4 sm:$0xff]  }
  0x4e   :  { %v36_v21 = vld [vmem:[%s4450_s0 + $0x38] sm:$0xff] }
  0x4f   :  { %1774 = vmatpush1.bf16.msra.mxu1 %v2988_v23  ;;  %v3072_v23 = vld [vmem:[%s4449_s1 + $0x228] ss:$16 sps:$4 sm:$0xff]  }
  0x50   :  { %1692 = vmatpush1.bf16.msra.mxu0 %v2985_v22  ;;  %1775 = vmatprep.subr.bf16.mxu1 %v2996_v25  ;;  %v3069_v22 = vld [vmem:[%s4449_s1 + $0x620] ss:$16 sps:$4 sm:$0xff]   ;;  %v3077_v25 = vld [vmem:[%s4449_s1 + $0x644] ss:$16 sps:$4 sm:$0xff]  }
  0x51   :  { %1693 = vmatprep.subr.bf16.mxu0 %v2993_v24  ;;  %v3842_v24 = vpack.c.bf16 %v36_v21, %v36_v21  ;;  %v3161_v21 = vld [vmem:[%s4449_s1 + $0x40c] ss:$16 sps:$4 sm:$0xff]  }
  0x53   :  { %1776 = vmatpush1.bf16.msra.mxu1 %v2994_v27  ;;  %v3078_v27 = vld [vmem:[%s4449_s1 + $0x248] ss:$16 sps:$4 sm:$0xff]  }
  0x54   :  { %1694 = vmatpush1.bf16.msra.mxu0 %v2991_v26  ;;  %1777 = vmatprep.subr.bf16.mxu1 %v3002_v29  ;;  %v3075_v26 = vld [vmem:[%s4449_s1 + $0x640] ss:$16 sps:$4 sm:$0xff]  }
  0x55   :  { %1695 = vmatprep.subr.bf16.mxu0 %v2999_v28  ;;  %v3083_v28 = vld [vmem:[%s4449_s1 + $0x664] ss:$16 sps:$4 sm:$0xff]   ;;  %v3081_v29 = vld [vmem:[%s4449_s1 + $0x660] ss:$16 sps:$4 sm:$0xff]  }
  0x57   :  { %1778 = vmatpush1.bf16.msra.mxu1 %v3000_v31  ;;  %v3089_v31 = vld [vmem:[%s4449_s1 + $0x684] ss:$16 sps:$4 sm:$0xff]  }
  0x58   :  { %1696 = vmatpush1.bf16.msra.mxu0 %v2997_v30  ;;  %1779 = vmatprep.subr.bf16.mxu1 %v3008_v33  ;;  %v3084_v30 = vld [vmem:[%s4449_s1 + $0x268] ss:$16 sps:$4 sm:$0xff]   ;;  %v3087_v33 = vld [vmem:[%s4449_s1 + $0x680] ss:$16 sps:$4 sm:$0xff]  }
  0x59   :  { %1697 = vmatprep.subr.bf16.mxu0 %v3005_v32  ;;  %v3092_v32 = vld [vmem:[%s4449_s1 + $0x28c] ss:$16 sps:$4 sm:$0xff]  }
  0x5b   :  { %1780 = vmatpush1.bf16.msra.mxu1 %v3006_v37  ;;  %v3098_v37 = vld [vmem:[%s4449_s1 + $0x2ac] ss:$16 sps:$4 sm:$0xff]  }
  0x5c   :  { %1698 = vmatpush1.bf16.msra.mxu0 %v3003_v35  ;;  %1781 = vmatprep.subr.bf16.mxu1 %v3014_v39  ;;  %v3095_v35 = vld [vmem:[%s4449_s1 + $0x6a4] ss:$16 sps:$4 sm:$0xff]   ;;  %v3096_v39 = vld [vmem:[%s4449_s1 + $0x2a8] ss:$16 sps:$4 sm:$0xff]  }
  0x5d   :  { %1699 = vmatprep.subr.bf16.mxu0 %v3011_v38  ;;  %v3093_v38 = vld [vmem:[%s4449_s1 + $0x6a0] ss:$16 sps:$4 sm:$0xff]  }
  0x5f   :  { %1782 = vmatpush1.bf16.msra.mxu1 %v3012_v41  ;;  %v3104_v41 = vld [vmem:[%s4449_s1 + $0x2cc] ss:$16 sps:$4 sm:$0xff]  }
  0x60   :  { %1700 = vmatpush1.bf16.msra.mxu0 %v3009_v40  ;;  %1783 = vmatprep.subr.bf16.mxu1 %v3020_v43  ;;  %v3101_v40 = vld [vmem:[%s4449_s1 + $0x6c4] ss:$16 sps:$4 sm:$0xff]   ;;  %v3102_v43 = vld [vmem:[%s4449_s1 + $0x2c8] ss:$16 sps:$4 sm:$0xff]  }
  0x61   :  { %1701 = vmatprep.subr.bf16.mxu0 %v3017_v42  ;;  %v3099_v42 = vld [vmem:[%s4449_s1 + $0x6c0] ss:$16 sps:$4 sm:$0xff]  }
  0x63   :  { %1784 = vmatpush1.bf16.msra.mxu1 %v3018_v45  ;;  %v3110_v45 = vld [vmem:[%s4449_s1 + $0x2ec] ss:$16 sps:$4 sm:$0xff]  }
  0x64   :  { %1702 = vmatpush1.bf16.msra.mxu0 %v3015_v44  ;;  %1785 = vmatprep.subr.bf16.mxu1 %v3026_v47  ;;  %v3107_v44 = vld [vmem:[%s4449_s1 + $0x6e4] ss:$16 sps:$4 sm:$0xff]   ;;  %v3108_v47 = vld [vmem:[%s4449_s1 + $0x2e8] ss:$16 sps:$4 sm:$0xff]  }
  0x65   :  { %1703 = vmatprep.subr.bf16.mxu0 %v3023_v46  ;;  %v3105_v46 = vld [vmem:[%s4449_s1 + $0x6e0] ss:$16 sps:$4 sm:$0xff]  }
  0x67   :  { %1786 = vmatpush1.bf16.msra.mxu1 %v3024_v49  ;;  %v3116_v49 = vld [vmem:[%s4449_s1 + $0x30c] ss:$16 sps:$4 sm:$0xff]  }
  0x68   :  { %1704 = vmatpush1.bf16.msra.mxu0 %v3021_v48  ;;  %1787 = vmatprep.subr.bf16.mxu1 %v3032_v51  ;;  %v3113_v48 = vld [vmem:[%s4449_s1 + $0x704] ss:$16 sps:$4 sm:$0xff]   ;;  %v3114_v51 = vld [vmem:[%s4449_s1 + $0x308] ss:$16 sps:$4 sm:$0xff]  }
  0x69   :  { %1705 = vmatprep.subr.bf16.mxu0 %v3029_v50  ;;  %v3111_v50 = vld [vmem:[%s4449_s1 + $0x700] ss:$16 sps:$4 sm:$0xff]  }
  0x6b   :  { %1788 = vmatpush1.bf16.msra.mxu1 %v3030_v54  ;;  %v3122_v54 = vld [vmem:[%s4449_s1 + $0x32c] ss:$16 sps:$4 sm:$0xff]  }
  0x6c   :  { %1706 = vmatpush1.bf16.msra.mxu0 %v3027_v53  ;;  %1789 = vmatprep.subr.bf16.mxu1 %v3038_v56  ;;  %v3119_v53 = vld [vmem:[%s4449_s1 + $0x724] ss:$16 sps:$4 sm:$0xff]   ;;  %v3120_v56 = vld [vmem:[%s4449_s1 + $0x328] ss:$16 sps:$4 sm:$0xff]  }
  0x6d   :  { %1707 = vmatprep.subr.bf16.mxu0 %v3035_v55  ;;  %v3117_v55 = vld [vmem:[%s4449_s1 + $0x720] ss:$16 sps:$4 sm:$0xff]  }
  0x6f   :  { %1790 = vmatpush1.bf16.msra.mxu1 %v3036_v58  ;;  %v3128_v58 = vld [vmem:[%s4449_s1 + $0x34c] ss:$16 sps:$4 sm:$0xff]  }
  0x70   :  { %1708 = vmatpush1.bf16.msra.mxu0 %v3033_v57  ;;  %1791 = vmatprep.subr.bf16.mxu1 %v3044_v60  ;;  %v3125_v57 = vld [vmem:[%s4449_s1 + $0x744] ss:$16 sps:$4 sm:$0xff]   ;;  %v3126_v60 = vld [vmem:[%s4449_s1 + $0x348] ss:$16 sps:$4 sm:$0xff]  }
  0x71   :  { %1709 = vmatprep.subr.bf16.mxu0 %v3041_v59  ;;  %v3123_v59 = vld [vmem:[%s4449_s1 + $0x740] ss:$16 sps:$4 sm:$0xff]  }
  0x73   :  { %1792 = vmatpush1.bf16.msra.mxu1 %v3042_v62  ;;  %v3134_v62 = vld [vmem:[%s4449_s1 + $0x36c] ss:$16 sps:$4 sm:$0xff]  }
  0x74   :  { %1710 = vmatpush1.bf16.msra.mxu0 %v3039_v61  ;;  %1793 = vmatprep.subr.bf16.mxu1 %v3050_v0  ;;  %v3131_v61 = vld [vmem:[%s4449_s1 + $0x764] ss:$16 sps:$4 sm:$0xff]   ;;  %v3132_v0 = vld [vmem:[%s4449_s1 + $0x368] ss:$16 sps:$4 sm:$0xff]  }
  0x75   :  { %1711 = vmatprep.subr.bf16.mxu0 %v3047_v63  ;;  %v3129_v63 = vld [vmem:[%s4449_s1 + $0x760] ss:$16 sps:$4 sm:$0xff]  }
  0x77   :  { %1794 = vmatpush1.bf16.msra.mxu1 %v3048_v2  ;;  %v3140_v2 = vld [vmem:[%s4449_s1 + $0x38c] ss:$16 sps:$4 sm:$0xff]  }
  0x78   :  { %1712 = vmatpush1.bf16.msra.mxu0 %v3045_v1  ;;  %1795 = vmatprep.subr.bf16.mxu1 %v3056_v4  ;;  %v3137_v1 = vld [vmem:[%s4449_s1 + $0x784] ss:$16 sps:$4 sm:$0xff]   ;;  %v3138_v4 = vld [vmem:[%s4449_s1 + $0x388] ss:$16 sps:$4 sm:$0xff]  }
  0x79   :  { %1713 = vmatprep.subr.bf16.mxu0 %v3053_v3  ;;  %v3135_v3 = vld [vmem:[%s4449_s1 + $0x780] ss:$16 sps:$4 sm:$0xff]  }
  0x7b   :  { %1796 = vmatpush1.bf16.msra.mxu1 %v3054_v6  ;;  %v3146_v6 = vld [vmem:[%s4449_s1 + $0x3ac] ss:$16 sps:$4 sm:$0xff]  }
  0x7c   :  { %1714 = vmatpush1.bf16.msra.mxu0 %v3051_v5  ;;  %1797 = vmatprep.subr.bf16.mxu1 %v3062_v9  ;;  %v3143_v5 = vld [vmem:[%s4449_s1 + $0x7a4] ss:$16 sps:$4 sm:$0xff]   ;;  %v3144_v9 = vld [vmem:[%s4449_s1 + $0x3a8] ss:$16 sps:$4 sm:$0xff]  }
  0x7d   :  { %1715 = vmatprep.subr.bf16.mxu0 %v3059_v7  ;;  %v3141_v7 = vld [vmem:[%s4449_s1 + $0x7a0] ss:$16 sps:$4 sm:$0xff]  }
  0x7f   :  { %1798 = vmatpush1.bf16.msra.mxu1 %v3060_v12  ;;  %v3152_v12 = vld [vmem:[%s4449_s1 + $0x3cc] ss:$16 sps:$4 sm:$0xff]  }
  0x80   :  { %1716 = vmatpush1.bf16.msra.mxu0 %v3057_v10  ;;  %1808 = vmatprep.subr.bf16.mxu1 %v3068_v15  ;;  %v3149_v10 = vld [vmem:[%s4449_s1 + $0x7c4] ss:$16 sps:$4 sm:$0xff]  }
  0x81   :  { %1726 = vmatprep.subr.bf16.mxu0 %v3065_v14  ;;  %v3150_v14 = vld [vmem:[%s4449_s1 + $0x3c8] ss:$16 sps:$4 sm:$0xff]   ;;  %v3155_v15 = vld [vmem:[%s4449_s1 + $0x7e4] ss:$16 sps:$4 sm:$0xff]  }
  0x82   :  { %1800 = vmatmul.mubr.bf16.vlgmr.msra.gmra.mrb[4].mxu1 %v3609_v8  ;;  %v3080_v8 = vld [vmem:[%s4449_s1 + $0x24c] ss:$16 sps:$4 sm:$0xff]  }
  0x83   :  { %1718 = vmatmul.mubr.bf16.vlgmr.msra.gmra.mrb[0].mxu0 %v3817_v16  ;;  %1809 = vmatpush1.bf16.msra.mxu1 %v3066_v18  ;;  %v3153_v18 = vld [vmem:[%s4449_s1 + $0x7e0] ss:$16 sps:$4 sm:$0xff]  }
  0x84   :  { %1727 = vmatpush1.bf16.msra.mxu0 %v3063_v17  ;;  %1810 = vmatprep.subr.bf16.mxu1 %v3074_v20  ;;  %v3158_v17 = vld [vmem:[%s4449_s1 + $0x3ec] ss:$16 sps:$4 sm:$0xff]   ;;  %v35_v20 = vld [vmem:[%s4450_s0 + $0x30] sm:$0xff] }
  0x85   :  { %1728 = vmatprep.subr.bf16.mxu0 %v3071_v19  ;;  %1758 = vmatprep.mubr.bf16.mxu0 %v3842_v24  ;;  %v3156_v19 = vld [vmem:[%s4449_s1 + $0x3e8] ss:$16 sps:$4 sm:$0xff]  }
  0x86   :  { %1840 = vmatprep.mubr.bf16.mxu1 %v3548_v52  ;;  %v3086_v52 = vld [vmem:[%s4449_s1 + $0x26c] ss:$16 sps:$4 sm:$0xff]  }
  0x87   :  { %1811 = vmatpush1.bf16.msra.mxu1 %v3072_v23  ;;  %v3159_v23 = vld [vmem:[%s4449_s1 + $0x408] ss:$16 sps:$4 sm:$0xff]  }
  0x88   :  { %1729 = vmatpush1.bf16.msra.mxu0 %v3069_v22  ;;  %1812 = vmatprep.subr.bf16.mxu1 %v3080_v8  ;;  %v4020_v22 = vpack.c.bf16 %v35_v20, %v35_v20  ;;  %v3162_v8 = vld [vmem:[%s4449_s1 + $0x428] ss:$16 sps:$4 sm:$0xff]   ;;  %v3209_v20 = vld [vmem:[%s4449_s1 + $0x60c] ss:$16 sps:$4 sm:$0xff]  }
  0x89   :  { %1730 = vmatprep.subr.bf16.mxu0 %v3077_v25  ;;  %v3164_v25 = vld [vmem:[%s4449_s1 + $0x42c] ss:$16 sps:$4 sm:$0xff]  }
  0x8b   :  { %1813 = vmatpush1.bf16.msra.mxu1 %v3078_v27  ;;  %v3255_v27 = vld [vmem:[%s4451_s3] ss:$8 sps:$4 sm:$0xff]  }
  0x8c   :  { %1731 = vmatpush1.bf16.msra.mxu0 %v3075_v26  ;;  %1814 = vmatprep.subr.bf16.mxu1 %v3086_v52  ;;  %v3167_v26 = vld [vmem:[%s4449_s1 + $0x44c] ss:$16 sps:$4 sm:$0xff]   ;;  %v3165_v52 = vld [vmem:[%s4449_s1 + $0x448] ss:$16 sps:$4 sm:$0xff]  }
  0x8d   :  { %1732 = vmatprep.subr.bf16.mxu0 %v3083_v28  ;;  %v3260_v28 = vld [vmem:[%s4451_s3 + $0x14] ss:$8 sps:$4 sm:$0xff]  }
  0x8f   :  { %1815 = vmatpush1.bf16.msra.mxu1 %v3084_v30  ;;  %v3263_v30 = vld [vmem:[%s4451_s3 + $0x24] ss:$8 sps:$4 sm:$0xff]  }
  0x90   :  { %1733 = vmatpush1.bf16.msra.mxu0 %v3081_v29  ;;  %1816 = vmatprep.subr.bf16.mxu1 %v3092_v32  ;;  %v3258_v29 = vld [vmem:[%s4451_s3 + $0x10] ss:$8 sps:$4 sm:$0xff]   ;;  %v3173_v32 = vld [vmem:[%s4449_s1 + $0x48c] ss:$16 sps:$4 sm:$0xff]  }
  0x91   :  { %1734 = vmatprep.subr.bf16.mxu0 %v3089_v31  ;;  %v3168_v31 = vld [vmem:[%s4449_s1 + $0x468] ss:$16 sps:$4 sm:$0xff]  }
  0x93   :  { %1817 = vmatpush1.bf16.msra.mxu1 %v3090_v34  ;;  %v3266_v34 = vld [vmem:[%s4451_s3 + $0x34] ss:$8 sps:$4 sm:$0xff]  }
  0x94   :  { %1735 = vmatpush1.bf16.msra.mxu0 %v3087_v33  ;;  %1818 = vmatprep.subr.bf16.mxu1 %v3098_v37  ;;  %v3261_v33 = vld [vmem:[%s4451_s3 + $0x20] ss:$8 sps:$4 sm:$0xff]   ;;  %v3176_v37 = vld [vmem:[%s4449_s1 + $0x4ac] ss:$16 sps:$4 sm:$0xff]  }
  0x95   :  { %1736 = vmatprep.subr.bf16.mxu0 %v3095_v35  ;;  %v3171_v35 = vld [vmem:[%s4449_s1 + $0x488] ss:$16 sps:$4 sm:$0xff]  }
  0x97   :  { %1819 = vmatpush1.bf16.msra.mxu1 %v3096_v39  ;;  %v3269_v39 = vld [vmem:[%s4451_s3 + $0x44] ss:$8 sps:$4 sm:$0xff]  }
  0x98   :  { %1737 = vmatpush1.bf16.msra.mxu0 %v3093_v38  ;;  %1820 = vmatprep.subr.bf16.mxu1 %v3104_v41  ;;  %v3264_v38 = vld [vmem:[%s4451_s3 + $0x30] ss:$8 sps:$4 sm:$0xff]   ;;  %v3179_v41 = vld [vmem:[%s4449_s1 + $0x4cc] ss:$16 sps:$4 sm:$0xff]  }
  0x99   :  { %1738 = vmatprep.subr.bf16.mxu0 %v3101_v40  ;;  %v3174_v40 = vld [vmem:[%s4449_s1 + $0x4a8] ss:$16 sps:$4 sm:$0xff]  }
  0x9b   :  { %1821 = vmatpush1.bf16.msra.mxu1 %v3102_v43  ;;  %v3272_v43 = vld [vmem:[%s4451_s3 + $0x54] ss:$8 sps:$4 sm:$0xff]  }
  0x9c   :  { %1739 = vmatpush1.bf16.msra.mxu0 %v3099_v42  ;;  %1822 = vmatprep.subr.bf16.mxu1 %v3110_v45  ;;  %v3267_v42 = vld [vmem:[%s4451_s3 + $0x40] ss:$8 sps:$4 sm:$0xff]   ;;  %v3270_v45 = vld [vmem:[%s4451_s3 + $0x50] ss:$8 sps:$4 sm:$0xff]  }
  0x9d   :  { %1740 = vmatprep.subr.bf16.mxu0 %v3107_v44  ;;  %v3177_v44 = vld [vmem:[%s4449_s1 + $0x4c8] ss:$16 sps:$4 sm:$0xff]  }
  0x9f   :  { %1823 = vmatpush1.bf16.msra.mxu1 %v3108_v47  ;;  %v3275_v47 = vld [vmem:[%s4451_s3 + $0x64] ss:$8 sps:$4 sm:$0xff]  }
  0xa0   :  { %1741 = vmatpush1.bf16.msra.mxu0 %v3105_v46  ;;  %1824 = vmatprep.subr.bf16.mxu1 %v3116_v49  ;;  %v3182_v46 = vld [vmem:[%s4449_s1 + $0x4ec] ss:$16 sps:$4 sm:$0xff]   ;;  %v3273_v49 = vld [vmem:[%s4451_s3 + $0x60] ss:$8 sps:$4 sm:$0xff]  }
  0xa1   :  { %1742 = vmatprep.subr.bf16.mxu0 %v3113_v48  ;;  %v3180_v48 = vld [vmem:[%s4449_s1 + $0x4e8] ss:$16 sps:$4 sm:$0xff]  }
  0xa3   :  { %1825 = vmatpush1.bf16.msra.mxu1 %v3114_v51  ;;  %v3278_v51 = vld [vmem:[%s4451_s3 + $0x74] ss:$8 sps:$4 sm:$0xff]  }
  0xa4   :  { %1743 = vmatpush1.bf16.msra.mxu0 %v3111_v50  ;;  %1826 = vmatprep.subr.bf16.mxu1 %v3122_v54  ;;  %v3185_v50 = vld [vmem:[%s4449_s1 + $0x50c] ss:$16 sps:$4 sm:$0xff]   ;;  %v3276_v54 = vld [vmem:[%s4451_s3 + $0x70] ss:$8 sps:$4 sm:$0xff]  }
  0xa5   :  { %1744 = vmatprep.subr.bf16.mxu0 %v3119_v53  ;;  %v3183_v53 = vld [vmem:[%s4449_s1 + $0x508] ss:$16 sps:$4 sm:$0xff]  }
  0xa7   :  { %1827 = vmatpush1.bf16.msra.mxu1 %v3120_v56  ;;  %v3281_v56 = vld [vmem:[%s4451_s3 + $0x84] ss:$8 sps:$4 sm:$0xff]  }
  0xa8   :  { %1745 = vmatpush1.bf16.msra.mxu0 %v3117_v55  ;;  %1828 = vmatprep.subr.bf16.mxu1 %v3128_v58  ;;  %v3188_v55 = vld [vmem:[%s4449_s1 + $0x52c] ss:$16 sps:$4 sm:$0xff]   ;;  %v3279_v58 = vld [vmem:[%s4451_s3 + $0x80] ss:$8 sps:$4 sm:$0xff]  }
  0xa9   :  { %1746 = vmatprep.subr.bf16.mxu0 %v3125_v57  ;;  %v3186_v57 = vld [vmem:[%s4449_s1 + $0x528] ss:$16 sps:$4 sm:$0xff]  }
  0xab   :  { %1829 = vmatpush1.bf16.msra.mxu1 %v3126_v60  ;;  %v3284_v60 = vld [vmem:[%s4451_s3 + $0x94] ss:$8 sps:$4 sm:$0xff]  }
  0xac   :  { %1747 = vmatpush1.bf16.msra.mxu0 %v3123_v59  ;;  %1830 = vmatprep.subr.bf16.mxu1 %v3134_v62  ;;  %v3191_v59 = vld [vmem:[%s4449_s1 + $0x54c] ss:$16 sps:$4 sm:$0xff]   ;;  %v3282_v62 = vld [vmem:[%s4451_s3 + $0x90] ss:$8 sps:$4 sm:$0xff]  }
  0xad   :  { %1748 = vmatprep.subr.bf16.mxu0 %v3131_v61  ;;  %v3189_v61 = vld [vmem:[%s4449_s1 + $0x548] ss:$16 sps:$4 sm:$0xff]  }
  0xaf   :  { %1831 = vmatpush1.bf16.msra.mxu1 %v3132_v0  ;;  %v3287_v0 = vld [vmem:[%s4451_s3 + $0xa4] ss:$8 sps:$4 sm:$0xff]  }
  0xb0   :  { %1749 = vmatpush1.bf16.msra.mxu0 %v3129_v63  ;;  %1832 = vmatprep.subr.bf16.mxu1 %v3140_v2  ;;  %v3194_v63 = vld [vmem:[%s4449_s1 + $0x56c] ss:$16 sps:$4 sm:$0xff]   ;;  %v3285_v2 = vld [vmem:[%s4451_s3 + $0xa0] ss:$8 sps:$4 sm:$0xff]  }
  0xb1   :  { %1750 = vmatprep.subr.bf16.mxu0 %v3137_v1  ;;  %v3192_v1 = vld [vmem:[%s4449_s1 + $0x568] ss:$16 sps:$4 sm:$0xff]  }
  0xb3   :  { %1833 = vmatpush1.bf16.msra.mxu1 %v3138_v4  ;;  %v3290_v4 = vld [vmem:[%s4451_s3 + $0xb4] ss:$8 sps:$4 sm:$0xff]  }
  0xb4   :  { %1751 = vmatpush1.bf16.msra.mxu0 %v3135_v3  ;;  %1834 = vmatprep.subr.bf16.mxu1 %v3146_v6  ;;  %v3197_v3 = vld [vmem:[%s4449_s1 + $0x58c] ss:$16 sps:$4 sm:$0xff]   ;;  %v3288_v6 = vld [vmem:[%s4451_s3 + $0xb0] ss:$8 sps:$4 sm:$0xff]  }
  0xb5   :  { %1752 = vmatprep.subr.bf16.mxu0 %v3143_v5  ;;  %v3195_v5 = vld [vmem:[%s4449_s1 + $0x588] ss:$16 sps:$4 sm:$0xff]  }
  0xb7   :  { %1835 = vmatpush1.bf16.msra.mxu1 %v3144_v9  ;;  %v3293_v9 = vld [vmem:[%s4451_s3 + $0xc4] ss:$8 sps:$4 sm:$0xff]  }
  0xb8   :  { %1753 = vmatpush1.bf16.msra.mxu0 %v3141_v7  ;;  %1836 = vmatprep.subr.bf16.mxu1 %v3152_v12  ;;  %v3200_v7 = vld [vmem:[%s4449_s1 + $0x5ac] ss:$16 sps:$4 sm:$0xff]   ;;  %v3291_v12 = vld [vmem:[%s4451_s3 + $0xc0] ss:$8 sps:$4 sm:$0xff]  }
  0xb9   :  { %1754 = vmatprep.subr.bf16.mxu0 %v3149_v10  ;;  %v3198_v10 = vld [vmem:[%s4449_s1 + $0x5a8] ss:$16 sps:$4 sm:$0xff]  }
  0xbb   :  { %1837 = vmatpush1.bf16.msra.mxu1 %v3150_v14  ;;  %v3296_v14 = vld [vmem:[%s4451_s3 + $0xd4] ss:$8 sps:$4 sm:$0xff]  }
  0xbc   :  { %1755 = vmatpush1.bf16.msra.mxu0 %v3147_v13  ;;  %1838 = vmatprep.subr.bf16.mxu1 %v3158_v17  ;;  %v3203_v13 = vld [vmem:[%s4449_s1 + $0x5cc] ss:$16 sps:$4 sm:$0xff]   ;;  %v3294_v17 = vld [vmem:[%s4451_s3 + $0xd0] ss:$8 sps:$4 sm:$0xff]  }
  0xbd   :  { %1756 = vmatprep.subr.bf16.mxu0 %v3155_v15  ;;  %v3201_v15 = vld [vmem:[%s4449_s1 + $0x5c8] ss:$16 sps:$4 sm:$0xff]  }
  0xbf   :  { %1839 = vmatpush1.bf16.msra.mxu1 %v3156_v19  ;;  %v3204_v19 = vld [vmem:[%s4449_s1 + $0x5e8] ss:$16 sps:$4 sm:$0xff]  }
  0xc0   :  { %1757 = vmatpush1.bf16.msra.mxu0 %v3153_v18  ;;  %1849 = vmatprep.subr.bf16.mxu1 %v3161_v21  ;;  %v3206_v18 = vld [vmem:[%s4449_s1 + $0x5ec] ss:$16 sps:$4 sm:$0xff]   ;;  %v3207_v21 = vld [vmem:[%s4449_s1 + $0x608] ss:$16 sps:$4 sm:$0xff]  }
  0xc2   :  { %1841 = vmatmul.mubr.bf16.vlgmr.msra.gmra.mrb[4].mxu1 %v3617_v11  ;;  %v3257_v11 = vld [vmem:[%s4451_s3 + $0x4] ss:$8 sps:$4 sm:$0xff]  }
  0xc3   :  { %1759 = vmatmul.mubr.bf16.vlgmr.msra.gmra.mrb[0].mxu0 %v4020_v22  ;;  %1850 = vmatpush1.bf16.msra.mxu1 %v3159_v23  ;;  %v3212_v23 = vld [vmem:[%s4449_s1 + $0x62c] ss:$16 sps:$4 sm:$0xff]  }
  0xc4   :  { %1881 = vmatprep.mubr.bf16.mxu1 %v3694_v36  ;;  %1851 = vmatprep.subr.bf16.mxu1 %v3164_v25  ;;  %v3170_v36 = vld [vmem:[%s4449_s1 + $0x46c] ss:$16 sps:$4 sm:$0xff]   ;;  %v3210_v25 = vld [vmem:[%s4449_s1 + $0x628] ss:$16 sps:$4 sm:$0xff]  }
  0xc5   :  { %2343 = vmatprep.subr.bf16.mxu0 %v3257_v11  ;;  %v3219_v11 = vld [vmem:[%s4449_s1 + $0x688] ss:$16 sps:$4 sm:$0xff]  }
  0xc6   :  { %2344 = vmatpush1.bf16.msra.mxu0 %v3255_v27  ;;  %v3221_v27 = vld [vmem:[%s4449_s1 + $0x68c] ss:$16 sps:$4 sm:$0xff]  }
  0xc7   :  { %1852 = vmatpush1.bf16.msra.mxu1 %v3162_v8  ;;  %2345 = vmatprep.subr.bf16.mxu0 %v3260_v28  ;;  %v3215_v8 = vld [vmem:[%s4449_s1 + $0x64c] ss:$16 sps:$4 sm:$0xff]  }
  0xc8   :  { %1853 = vmatprep.subr.bf16.mxu1 %v3167_v26  ;;  %v3213_v26 = vld [vmem:[%s4449_s1 + $0x648] ss:$16 sps:$4 sm:$0xff]   ;;  %v3224_v28 = vld [vmem:[%s4449_s1 + $0x6ac] ss:$16 sps:$4 sm:$0xff]  }
  0xca   :  { %2346 = vmatpush1.bf16.msra.mxu0 %v3258_v29 }
  0xcb   :  { %1854 = vmatpush1.bf16.msra.mxu1 %v3165_v52  ;;  %2347 = vmatprep.subr.bf16.mxu0 %v3263_v30  ;;  %v3222_v52 = vld [vmem:[%s4449_s1 + $0x6a8] ss:$16 sps:$4 sm:$0xff]   ;;  %v3299_v30 = vld [vmem:[%s4451_s3 + $0xe4] ss:$8 sps:$4 sm:$0xff]  }
  0xcc   :  { %1855 = vmatprep.subr.bf16.mxu1 %v3170_v36  ;;  %v3227_v36 = vld [vmem:[%s4449_s1 + $0x6cc] ss:$16 sps:$4 sm:$0xff]  }
  0xce   :  { %2348 = vmatpush1.bf16.msra.mxu0 %v3261_v33 }
  0xcf   :  { %1856 = vmatpush1.bf16.msra.mxu1 %v3168_v31  ;;  %2349 = vmatprep.subr.bf16.mxu0 %v3266_v34  ;;  %v3225_v34 = vld [vmem:[%s4449_s1 + $0x6c8] ss:$16 sps:$4 sm:$0xff]  }
  0xd0   :  { %1857 = vmatprep.subr.bf16.mxu1 %v3173_v32  ;;  %v3297_v32 = vld [vmem:[%s4451_s3 + $0xe0] ss:$8 sps:$4 sm:$0xff]  }
  0xd2   :  { %2350 = vmatpush1.bf16.msra.mxu0 %v3264_v38  ;;  %v3302_v38 = vld [vmem:[%s4451_s3 + $0xf4] ss:$8 sps:$4 sm:$0xff]  }
  0xd3   :  { %1858 = vmatpush1.bf16.msra.mxu1 %v3171_v35  ;;  %2351 = vmatprep.subr.bf16.mxu0 %v3269_v39  ;;  %v3300_v39 = vld [vmem:[%s4451_s3 + $0xf0] ss:$8 sps:$4 sm:$0xff]  }
  0xd4   :  { %1859 = vmatprep.subr.bf16.mxu1 %v3176_v37  ;;  %v3230_v37 = vld [vmem:[%s4449_s1 + $0x6ec] ss:$16 sps:$4 sm:$0xff]  }
  0xd6   :  { %2352 = vmatpush1.bf16.msra.mxu0 %v3267_v42  ;;  %v3231_v42 = vld [vmem:[%s4449_s1 + $0x708] ss:$16 sps:$4 sm:$0xff]  }
  0xd7   :  { %1860 = vmatpush1.bf16.msra.mxu1 %v3174_v40  ;;  %2353 = vmatprep.subr.bf16.mxu0 %v3272_v43  ;;  %v3228_v40 = vld [vmem:[%s4449_s1 + $0x6e8] ss:$16 sps:$4 sm:$0xff]   ;;  %v3305_v43 = vld [vmem:[%s4451_s3 + $0x104] ss:$8 sps:$4 sm:$0xff]  }
  0xd8   :  { %1861 = vmatprep.subr.bf16.mxu1 %v3179_v41  ;;  %v3233_v41 = vld [vmem:[%s4449_s1 + $0x70c] ss:$16 sps:$4 sm:$0xff]  }
  0xda   :  { %2354 = vmatpush1.bf16.msra.mxu0 %v3270_v45  ;;  %v3234_v45 = vld [vmem:[%s4449_s1 + $0x728] ss:$16 sps:$4 sm:$0xff]  }
  0xdb   :  { %1862 = vmatpush1.bf16.msra.mxu1 %v3177_v44  ;;  %2355 = vmatprep.subr.bf16.mxu0 %v3275_v47  ;;  %v3236_v44 = vld [vmem:[%s4449_s1 + $0x72c] ss:$16 sps:$4 sm:$0xff]   ;;  %v3237_v47 = vld [vmem:[%s4449_s1 + $0x748] ss:$16 sps:$4 sm:$0xff]  }
  0xdc   :  { %1863 = vmatprep.subr.bf16.mxu1 %v3182_v46  ;;  %v3239_v46 = vld [vmem:[%s4449_s1 + $0x74c] ss:$16 sps:$4 sm:$0xff]  }
  0xde   :  { %2356 = vmatpush1.bf16.msra.mxu0 %v3273_v49  ;;  %v3240_v49 = vld [vmem:[%s4449_s1 + $0x768] ss:$16 sps:$4 sm:$0xff]  }
  0xdf   :  { %1864 = vmatpush1.bf16.msra.mxu1 %v3180_v48  ;;  %2357 = vmatprep.subr.bf16.mxu0 %v3278_v51  ;;  %v3242_v48 = vld [vmem:[%s4449_s1 + $0x76c] ss:$16 sps:$4 sm:$0xff]   ;;  %v3243_v51 = vld [vmem:[%s4449_s1 + $0x788] ss:$16 sps:$4 sm:$0xff]  }
  0xe0   :  { %1865 = vmatprep.subr.bf16.mxu1 %v3185_v50  ;;  %v3245_v50 = vld [vmem:[%s4449_s1 + $0x78c] ss:$16 sps:$4 sm:$0xff]  }
  0xe2   :  { %2358 = vmatpush1.bf16.msra.mxu0 %v3276_v54  ;;  %v3246_v54 = vld [vmem:[%s4449_s1 + $0x7a8] ss:$16 sps:$4 sm:$0xff]  }
  0xe3   :  { %1866 = vmatpush1.bf16.msra.mxu1 %v3183_v53  ;;  %2359 = vmatprep.subr.bf16.mxu0 %v3281_v56  ;;  %v3248_v53 = vld [vmem:[%s4449_s1 + $0x7ac] ss:$16 sps:$4 sm:$0xff]   ;;  %v3249_v56 = vld [vmem:[%s4449_s1 + $0x7c8] ss:$16 sps:$4 sm:$0xff]  }
  0xe4   :  { %1867 = vmatprep.subr.bf16.mxu1 %v3188_v55  ;;  %v3251_v55 = vld [vmem:[%s4449_s1 + $0x7cc] ss:$16 sps:$4 sm:$0xff]  }
  0xe6   :  { %2360 = vmatpush1.bf16.msra.mxu0 %v3279_v58  ;;  %v3252_v58 = vld [vmem:[%s4449_s1 + $0x7e8] ss:$16 sps:$4 sm:$0xff]  }
  0xe7   :  { %1868 = vmatpush1.bf16.msra.mxu1 %v3186_v57  ;;  %2361 = vmatprep.subr.bf16.mxu0 %v3284_v60  ;;  %v3254_v57 = vld [vmem:[%s4449_s1 + $0x7ec] ss:$16 sps:$4 sm:$0xff]  }
  0xe8   :  { %1869 = vmatprep.subr.bf16.mxu1 %v3191_v59  ;;  %v303_v59 = vlaneseq }
  0xea   :  { %2362 = vmatpush1.bf16.msra.mxu0 %v3282_v62  ;;  %v4318_v60 = vshrl.u32 %v303_v59, 7  ;;  %v4326_v62 = vld [vmem:[%s4452_s2] sm:$0xf] }
  0xeb   :  { %1870 = vmatpush1.bf16.msra.mxu1 %v3189_v61  ;;  %2363 = vmatprep.subr.bf16.mxu0 %v3287_v0 }
  0xec   :  { %1871 = vmatprep.subr.bf16.mxu1 %v3194_v63  ;;  %v4321_v61 = vsub.s32 0, %v4318_v60  ;;  %v309_v63 = vsub.s32 1, %v4318_v60 }
  0xee   :  { %2364 = vmatpush1.bf16.msra.mxu0 %v3285_v2  ;;  %v306_v0 = vrot.slane %v4326_v62, %v4321_v61 }
  0xef   :  { %1872 = vmatpush1.bf16.msra.mxu1 %v3192_v1  ;;  %2365 = vmatprep.subr.bf16.mxu0 %v3290_v4 }
  0xf0   :  { %1873 = vmatprep.subr.bf16.mxu1 %v3197_v3 }
  0xf2   :  { %2366 = vmatpush1.bf16.msra.mxu0 %v3288_v6 }
  0xf3   :  { %1874 = vmatpush1.bf16.msra.mxu1 %v3195_v5  ;;  %2367 = vmatprep.subr.bf16.mxu0 %v3293_v9 }
  0xf4   :  { %1875 = vmatprep.subr.bf16.mxu1 %v3200_v7 }
  0xf6   :  { %2368 = vmatpush1.bf16.msra.mxu0 %v3291_v12 }
  0xf7   :  { %1876 = vmatpush1.bf16.msra.mxu1 %v3198_v10  ;;  %2369 = vmatprep.subr.bf16.mxu0 %v3296_v14 }
  0xf8   :  { %1877 = vmatprep.subr.bf16.mxu1 %v3203_v13 }
  0xfa   :  { %2370 = vmatpush1.bf16.msra.mxu0 %v3294_v17  ;;  %v3303_v17 = vld [vmem:[%s4451_s3 + $0x100] ss:$8 sps:$4 sm:$0xff]  }
  0xfb   :  { %1878 = vmatpush1.bf16.msra.mxu1 %v3201_v15  ;;  %2371 = vmatprep.subr.bf16.mxu0 %v3299_v30  ;;  %v3327_v30 = vld [vmem:[%s4451_s3 + $0x180] ss:$8 sps:$4 sm:$0xff]  }
  0xfc   :  { %1879 = vmatprep.subr.bf16.mxu1 %v3206_v18 }
  0xfe   :  { %2372 = vmatpush1.bf16.msra.mxu0 %v3297_v32  ;;  %v3330_v32 = vld [vmem:[%s4451_s3 + $0x190] ss:$8 sps:$4 sm:$0xff]  }
  0xff   :  { %1880 = vmatpush1.bf16.msra.mxu1 %v3204_v19  ;;  %2373 = vmatprep.subr.bf16.mxu0 %v3302_v38  ;;  %v3308_v19 = vld [vmem:[%s4451_s3 + $0x114] ss:$8 sps:$4 sm:$0xff]   ;;  %v3341_v38 = vld [vmem:[%s4451_s3 + $0x1c4] ss:$8 sps:$4 sm:$0xff]  }
 0x100   :  { %1890 = vmatprep.subr.bf16.mxu1 %v3209_v20  ;;  %v3306_v20 = vld [vmem:[%s4451_s3 + $0x110] ss:$8 sps:$4 sm:$0xff]  }
 0x102   :  { %1882 = vmatmul.mubr.bf16.vlgmr.msra.gmra.mrb[4].mxu1 %v3817_v16  ;;  %v3218_v16 = vld [vmem:[%s4449_s1 + $0x66c] ss:$16 sps:$4 sm:$0xff]   ;;  %2374 = vmatpush1.bf16.msra.mxu0 %v3300_v39  ;;  %v3339_v39 = vld [vmem:[%s4451_s3 + $0x1c0] ss:$8 sps:$4 sm:$0xff]  }
 0x103   :  { %1891 = vmatpush1.bf16.msra.mxu1 %v3207_v21  ;;  %1922 = vmatprep.mubr.bf16.mxu1 %v3842_v24  ;;  %v3216_v24 = vld [vmem:[%s4449_s1 + $0x668] ss:$16 sps:$4 sm:$0xff]   ;;  %v3311_v21 = vld [vmem:[%s4451_s3 + $0x124] ss:$8 sps:$4 sm:$0xff]  }
 0x104   :  { %1892 = vmatprep.subr.bf16.mxu1 %v3212_v23  ;;  %2384 = vmatprep.subr.bf16.mxu0 %v3305_v43  ;;  %v3309_v23 = vld [vmem:[%s4451_s3 + $0x120] ss:$8 sps:$4 sm:$0xff]  }
 0x105   :  { %v3345_v43 = vld [vmem:[%s4451_s3 + $0x1e0] ss:$8 sps:$4 sm:$0xff]  }
 0x107   :  { %1893 = vmatpush1.bf16.msra.mxu1 %v3210_v25  ;;  %v3314_v25 = vld [vmem:[%s4451_s3 + $0x134] ss:$8 sps:$4 sm:$0xff]  }
 0x108   :  { %1894 = vmatprep.subr.bf16.mxu1 %v3215_v8  ;;  %v3312_v8 = vld [vmem:[%s4451_s3 + $0x130] ss:$8 sps:$4 sm:$0xff]  }
 0x10b   :  { %1895 = vmatpush1.bf16.msra.mxu1 %v3213_v26  ;;  %v3317_v26 = vld [vmem:[%s4451_s3 + $0x144] ss:$8 sps:$4 sm:$0xff]  }
 0x10c   :  { %1896 = vmatprep.subr.bf16.mxu1 %v3218_v16  ;;  %v3315_v16 = vld [vmem:[%s4451_s3 + $0x140] ss:$8 sps:$4 sm:$0xff]  }
 0x10f   :  { %1897 = vmatpush1.bf16.msra.mxu1 %v3216_v24  ;;  %v3320_v24 = vld [vmem:[%s4451_s3 + $0x154] ss:$8 sps:$4 sm:$0xff]  }
 0x110   :  { %1898 = vmatprep.subr.bf16.mxu1 %v3221_v27  ;;  %v3318_v27 = vld [vmem:[%s4451_s3 + $0x150] ss:$8 sps:$4 sm:$0xff]  }
 0x113   :  { %1899 = vmatpush1.bf16.msra.mxu1 %v3219_v11  ;;  %v3323_v11 = vld [vmem:[%s4451_s3 + $0x164] ss:$8 sps:$4 sm:$0xff]  }
 0x114   :  { %1900 = vmatprep.subr.bf16.mxu1 %v3224_v28  ;;  %v3321_v28 = vld [vmem:[%s4451_s3 + $0x160] ss:$8 sps:$4 sm:$0xff]  }
 0x115   :  { %v4243_v29 = vpop.f32.mrb[0].mxu1 }
 0x116   :  { %v1639_v31 = vpop.f32.mrb[1].mxu1  ;;  %v1638_v1 = vadd.f32 %v4243_v29, %v306_v0  ;;  %v3329_v29 = vld [vmem:[%s4451_s3 + $0x184] ss:$8 sps:$4 sm:$0xff]  }
 0x117   :  { %v1641_v33 = vpop.f32.mrb[2].mxu1  ;;  %1901 = vmatpush1.bf16.msra.mxu1 %v3222_v52  ;;  %v3326_v52 = vld [vmem:[%s4451_s3 + $0x174] ss:$8 sps:$4 sm:$0xff]  }
 0x118   :  { %v1642_v35 = vpop.f32.mrb[3].mxu1  ;;  %1902 = vmatprep.subr.bf16.mxu1 %v3227_v36  ;;  %v3324_v36 = vld [vmem:[%s4451_s3 + $0x170] ss:$8 sps:$4 sm:$0xff]   ;;  %v3335_v33 = vld [vmem:[%s4451_s3 + $0x1a4] ss:$8 sps:$4 sm:$0xff]  }
 0x119   :  { %v3338_v35 = vld [vmem:[%s4451_s3 + $0x1b4] ss:$8 sps:$4 sm:$0xff]  }
 0x11b   :  { %1903 = vmatpush1.bf16.msra.mxu1 %v3225_v34  ;;  %v3333_v34 = vld [vmem:[%s4451_s3 + $0x1a0] ss:$8 sps:$4 sm:$0xff]  }
 0x11c   :  { %1904 = vmatprep.subr.bf16.mxu1 %v3230_v37  ;;  %v3336_v37 = vld [vmem:[%s4451_s3 + $0x1b0] ss:$8 sps:$4 sm:$0xff]  }
 0x11f   :  { %1905 = vmatpush1.bf16.msra.mxu1 %v3228_v40  ;;  %v3344_v40 = vld [vmem:[%s4451_s3 + $0x1d4] ss:$8 sps:$4 sm:$0xff]  }
 0x120   :  { %1906 = vmatprep.subr.bf16.mxu1 %v3233_v41  ;;  %v3342_v41 = vld [vmem:[%s4451_s3 + $0x1d0] ss:$8 sps:$4 sm:$0xff]  }
 0x123   :  { %1907 = vmatpush1.bf16.msra.mxu1 %v3231_v42  ;;  %v3347_v42 = vld [vmem:[%s4451_s3 + $0x1e4] ss:$8 sps:$4 sm:$0xff]  }
 0x124   :  { %1908 = vmatprep.subr.bf16.mxu1 %v3236_v44  ;;  %v3350_v44 = vld [vmem:[%s4451_s3 + $0x1f4] ss:$8 sps:$4 sm:$0xff]  }
 0x127   :  { %1909 = vmatpush1.bf16.msra.mxu1 %v3234_v45  ;;  %v3348_v45 = vld [vmem:[%s4451_s3 + $0x1f0] ss:$8 sps:$4 sm:$0xff]  }
 0x128   :  { %1910 = vmatprep.subr.bf16.mxu1 %v3239_v46  ;;  %v313_v46 = vsub.s32 2, %v4318_v60 }
 0x12b   :  { %1911 = vmatpush1.bf16.msra.mxu1 %v3237_v47  ;;  %v317_v47 = vsub.s32 3, %v4318_v60 }
 0x12c   :  { %1912 = vmatprep.subr.bf16.mxu1 %v3242_v48  ;;  %v314_v48 = vrot.slane %v4326_v62, %v313_v46 }
 0x12f   :  { %1913 = vmatpush1.bf16.msra.mxu1 %v3240_v49  ;;  %v318_v49 = vrot.slane %v4326_v62, %v317_v47 }
 0x130   :  { %1914 = vmatprep.subr.bf16.mxu1 %v3245_v50 }
 0x133   :  { %1915 = vmatpush1.bf16.msra.mxu1 %v3243_v51 }
 0x134   :  { %1916 = vmatprep.subr.bf16.mxu1 %v3248_v53 }
 0x137   :  { %1917 = vmatpush1.bf16.msra.mxu1 %v3246_v54 }
 0x138   :  { %1918 = vmatprep.subr.bf16.mxu1 %v3251_v55 }
 0x13b   :  { %1919 = vmatpush1.bf16.msra.mxu1 %v3249_v56 }
 0x13c   :  { %1920 = vmatprep.subr.bf16.mxu1 %v3254_v57 }
 0x13f   :  { %1921 = vmatpush1.bf16.msra.mxu1 %v3252_v58 }
 0x142   :  { %1923 = vmatmul.mubr.bf16.vlgmr.msra.gmra.mrb[4].mxu1 %v4020_v22  ;;  %v310_v22 = vrot.slane %v4326_v62, %v309_v63  ;;  %v2835_v62 = vld.sshfl [vmem:[%s4453_s5] sm:$0x11 pattern:$0x75316420] }
 0x144   :  { %v1640_v2 = vadd.f32 %v1639_v31, %v310_v22  ;;  %v3332_v31 = vld [vmem:[%s4451_s3 + $0x194] ss:$8 sps:$4 sm:$0xff]  }
 0x196   :  { %v1760_v3 = vpop.f32.mrb[0].mxu0 }
 0x197   :  { %v2837_v4 = vadd.f32 %v1760_v3, %v1638_v1  ;;  %v1762_v5 = vpop.f32.mrb[1].mxu0 }
 0x198   :  { %v2839_v6 = vadd.f32 %v1762_v5, %v1640_v2  ;;  %v1764_v7 = vpop.f32.mrb[2].mxu0  ;;  %v3351_v2 = vmov 1966171168   ;;  %v2452_v5 = vcombine.high %v2835_v62, %v2835_v62 }
 0x199   :  { %vm1931_vm0 = vcmp.gt.f32.partialorder %v2837_v4, 0.0  ;;  %v1935_v9 = vmul.f32 0.2, %v2837_v4  ;;  %v1765_v10 = vpop.f32.mrb[3].mxu0  ;;  %v2454_v3 = vunpack.c.l.s4 %v3351_v2 }
 0x19a   :  { %vm1932_vm1 = vcmp.gt.f32.partialorder %v2839_v6, 0.0  ;;  %v1936_v12 = vmul.f32 0.2, %v2839_v6  ;;  %v3352_v10 = vmov 0  }
 0x19b   :  { %v1939_v13 = vsel %vm1931_vm0, %v2837_v4, %v1935_v9  ;;  %v2455_v4 = vunpack.c.0.s8 %v2454_v3  ;;  %2870 = vset.pattern.permute.xlu0 %v3352_v10 }
 0x19c   :  { %v1940_v14 = vsel %vm1932_vm1, %v2839_v6, %v1936_v12  ;;  %v1943_v18 = vpack.c.bf16 %v1939_v13, %v1939_v13  ;;  %v12_v12 = vstv %s4454_s6 }
 0x19d   :  { %v1944_v15 = vpack.c.bf16 %v1940_v14, %v1940_v14  ;;  %v2458_v6 = vsub.s32 %v2455_v4, %v4318_v60  ;;  %13 = vst [vmem:[#allocation2] sm:$0x1] %v12_v12  ;;  %v2011_v14 = vld [vmem:[%s4455_s4] sm:$0x3] }
 0x19f   :  { %2375 = vmatprep.mubr.bf16.mxu0 %v1944_v15  ;;  %v2466_v7 = vrot.slane %v2452_v5, %v2458_v6  ;;  %v2459_v9 = vrot.slane %v2835_v62, %v2458_v6  ;;  %v2016_v15 = vrot.slane %v2011_v14, %v4321_v61 }
 0x1a0   :  { %2376 = vmatmul.mubr.bf16.vlgmr.msra.gmra.mrb[4].mxu0 %v1943_v18 }
 0x1a1   :  { %2385 = vmatpush1.bf16.msra.mxu0 %v3303_v17  ;;  %2501 = vmatprep.mubr.bf16.mxu1 %v2466_v7  ;;  %v2020_v17 = vrot.slane %v2011_v14, %v309_v63 }
 0x1a2   :  { %2386 = vmatprep.subr.bf16.mxu0 %v3308_v19 }
 0x1a4   :  { %v2434_v13 = vld [vmem:[#allocation2] sm:$0x1] }
 0x1a5   :  { %2387 = vmatpush1.bf16.msra.mxu0 %v3306_v20  ;;  %2437 = vperm.xlu0 %2870, %v2434_v13  }
 0x1a6   :  { %2388 = vmatprep.subr.bf16.mxu0 %v3311_v21 }
 0x1a9   :  { %2389 = vmatpush1.bf16.msra.mxu0 %v3309_v23 }
 0x1aa   :  { %2390 = vmatprep.subr.bf16.mxu0 %v3314_v25 }
 0x1ad   :  { %2391 = vmatpush1.bf16.msra.mxu0 %v3312_v8 }
 0x1ae   :  { %2392 = vmatprep.subr.bf16.mxu0 %v3317_v26 }
 0x1b1   :  { %2393 = vmatpush1.bf16.msra.mxu0 %v3315_v16 }
 0x1b2   :  { %2394 = vmatprep.subr.bf16.mxu0 %v3320_v24 }
 0x1b5   :  { %2395 = vmatpush1.bf16.msra.mxu0 %v3318_v27 }
 0x1b6   :  { %2396 = vmatprep.subr.bf16.mxu0 %v3323_v11 }
 0x1b9   :  { %2397 = vmatpush1.bf16.msra.mxu0 %v3321_v28 }
 0x1ba   :  { %2398 = vmatprep.subr.bf16.mxu0 %v3326_v52 }
 0x1bd   :  { %2399 = vmatpush1.bf16.msra.mxu0 %v3324_v36 }
 0x1be   :  { %2400 = vmatprep.subr.bf16.mxu0 %v3329_v29 }
 0x1c1   :  { %2401 = vmatpush1.bf16.msra.mxu0 %v3327_v30 }
 0x1c2   :  { %2402 = vmatprep.subr.bf16.mxu0 %v3332_v31 }
 0x1c5   :  { %2403 = vmatpush1.bf16.msra.mxu0 %v3330_v32 }
 0x1c6   :  { %2404 = vmatprep.subr.bf16.mxu0 %v3335_v33 }
 0x1c9   :  { %2405 = vmatpush1.bf16.msra.mxu0 %v3333_v34 }
 0x1ca   :  { %2406 = vmatprep.subr.bf16.mxu0 %v3338_v35 }
 0x1cd   :  { %2407 = vmatpush1.bf16.msra.mxu0 %v3336_v37 }
 0x1ce   :  { %2408 = vmatprep.subr.bf16.mxu0 %v3341_v38 }
 0x1d1   :  { %2409 = vmatpush1.bf16.msra.mxu0 %v3339_v39 }
 0x1d2   :  { %2410 = vmatprep.subr.bf16.mxu0 %v3344_v40 }
 0x1d5   :  { %2411 = vmatpush1.bf16.msra.mxu0 %v3342_v41 }
 0x1d6   :  { %2412 = vmatprep.subr.bf16.mxu0 %v3347_v42 }
 0x1d9   :  { %2413 = vmatpush1.bf16.msra.mxu0 %v3345_v43 }
 0x1da   :  { %2414 = vmatprep.subr.bf16.mxu0 %v3350_v44 }
 0x1dd   :  { %2415 = vmatpush1.bf16.msra.mxu0 %v3348_v45 }
 0x215   :  { %v1924_v50 = vpop.f32.mrb[4].mxu1 }
 0x216   :  { %v2840_v51 = vadd.f32 %v1924_v50, %v314_v48  ;;  %v1926_v53 = vpop.f32.mrb[5].mxu1 }
 0x217   :  { %v2841_v54 = vadd.f32 %v1926_v53, %v318_v49  ;;  %v1928_v55 = vpop.f32.mrb[6].mxu1 }
 0x218   :  { %vm1933_vm2 = vcmp.gt.f32.partialorder %v2840_v51, 0.0  ;;  %v1937_v56 = vmul.f32 0.2, %v2840_v51  ;;  %v1929_v57 = vpop.f32.mrb[7].mxu1 }
 0x219   :  { %vm1934_vm3 = vcmp.gt.f32.partialorder %v2841_v54, 0.0  ;;  %v1938_v58 = vmul.f32 0.2, %v2841_v54 }
 0x21a   :  { %v1941_v59 = vsel %vm1933_vm2, %v2840_v51, %v1937_v56 }
 0x21b   :  { %v1942_v0 = vsel %vm1934_vm3, %v2841_v54, %v1938_v58  ;;  %v1945_v1 = vpack.c.bf16 %v1941_v59, %v1941_v59 }
 0x21c   :  { %v1946_v22 = vpack.c.bf16 %v1942_v0, %v1942_v0 }
 0x21e   :  { %2416 = vmatprep.mubr.bf16.mxu0 %v1946_v22 }
 0x21f   :  { %2417 = vmatmul.mubr.bf16.vlgmr.msra.gmra.mrb[4].mxu0 %v1945_v1 }
 0x224   :  { %v2438_v28 = vpop.permute.xlu0 %2437 }
 0x225   :  { %v2443_v60 = vrot.slane %v2438_v28, %v4321_v61 }
 0x2f2   :  { %v2418_v18 = vpop.f32.mrb[4].mxu0 }
 0x2f3   :  { %v2842_v19 = vadd.f32 %v2418_v18, %v2016_v15  ;;  %v2420_v20 = vpop.f32.mrb[5].mxu0 }
 0x2f4   :  { %v2843_v21 = vadd.f32 %v2420_v20, %v2020_v17  ;;  %v2422_v23 = vpop.f32.mrb[6].mxu0 }
 0x2f5   :  { %vm2425_vm4 = vcmp.gt.f32.partialorder %v2842_v19, 0.0  ;;  %v2427_v25 = vmul.f32 0.2, %v2842_v19  ;;  %v2423_v8 = vpop.f32.mrb[7].mxu0 }
 0x2f6   :  { %vm2426_vm5 = vcmp.gt.f32.partialorder %v2843_v21, 0.0  ;;  %v2428_v26 = vmul.f32 0.2, %v2843_v21 }
 0x2f7   :  { %v2429_v16 = vsel %vm2425_vm4, %v2842_v19, %v2427_v25 }
 0x2f8   :  { %v2430_v24 = vsel %vm2426_vm5, %v2843_v21, %v2428_v26  ;;  %v2432_v11 = vpack.c.bf16 %v2429_v16, %v2429_v16 }
 0x2f9   :  { %v2433_v27 = vpack.c.bf16 %v2430_v24, %v2430_v24 }
 0x2fb   :  { %2469 = vmatprep.subr.bf16.mxu1 %v2433_v27 }
 0x2fc   :  { %2470 = vmatpush1.bf16.xpose.msra.mxu1 %v2432_v11 }
 0x303   :  { %2502 = vmatmul.mubr.bf16.vlgmr.msra.gmra.mrb[8].mxu1 %v2459_v9 }
 0x3d6   :  { %v2503_v63 = vpop.f32.mrb[8].mxu1 }
 0x3d7   :  { %v2504_v52 = vadd.f32 %v2503_v63, %v2443_v60  ;;  %v2505_v36 = vpop.f32.mrb[9].mxu1 }
 0x3d8   :  { %v2506_v29 = vpop.f32.mrb[10].mxu1 }
 0x3d9   :  { %2510 = vst.msk [vmem:[%s4456_s7] sm:$0x1] %vm2509_vm6, %v2504_v52  ;;  %v2507_v30 = vpop.f32.mrb[11].mxu1 }

</bundles_post_ra>
